<compile_context>
chip_gen: v6e
topology: v6e:2x2x1
jax: 0.10.0
libtpu: 0.0.40
codegen_flags: <defaults>
</compile_context>

<pallas_src>
import jax
import jax.numpy as jnp
from jax import lax
from jax.experimental import pallas as pl
from jax.experimental.pallas import tpu as pltpu

F32 = jnp.float32
VPAD = 128          # lane-dense padded vocabulary width for the decoder output projection
NEG_BIG = -1e9      # bias for padded vocab columns so they never win the in-kernel argmax
SUBLANE = 8         # batch padded to a full sublane group


# ------------------------------------------------------------------ encoder kernel
def encoder_bigru(x_dirs, enc_kp, L, B):
    """x_dirs: (2, L*B, E) = [emb_src, time-reversed emb_src] flattened over (time, batch)."""
    _, LB, E = x_dirs.shape
    H3 = enc_kp["wi"].shape[-1]
    H = H3 // 3

    def kernel(x_ref, wi_ref, wh_ref, bi_ref, bh_ref, out_ref):
        wi, wh = wi_ref[0], wh_ref[0]            # (E, 3H), (H, 3H) -- gates packed [r | z | n]
        bi, bh = bi_ref[0], bh_ref[0]            # (1, 3H)

        # Hoisted input projection: one MXU-friendly (L*B, E) @ (E, 3H) matmul instead of
        # L tiny matmuls on the serial critical path.
        gx_all = jnp.dot(x_ref[0], wi, preferred_element_type=F32) + bi   # (L*B, 3H)

        h = jnp.zeros((B, H), F32)
        for t in range(L):                       # static unroll: tiny L, static slice indices
            gx = gx_all[t * B:(t + 1) * B]       # sublane-aligned (B = 8k) static slice
            gh = jnp.dot(h, wh, preferred_element_type=F32) + bh
            # TODO(synk): if H stays at 32, pad each gate to a 128-lane range to avoid the
            # masked sub-vreg lane slices below.
            r = jax.nn.sigmoid(gx[:, 0:H] + gh[:, 0:H])
            z = jax.nn.sigmoid(gx[:, H:2 * H] + gh[:, H:2 * H])
            n = jnp.tanh(gx[:, 2 * H:] + r * gh[:, 2 * H:])
            h = (1.0 - z) * n + z * h
            out_ref[0, t * B:(t + 1) * B] = h

    nb = lambda a: a.size * 4
    flops = 2 * (2 * LB * E * H3 + L * 2 * B * H * H3)
    transc = 2 * L * B * H3
    bytes_acc = (nb(x_dirs) + nb(enc_kp["wi"]) + nb(enc_kp["wh"])
                 + nb(enc_kp["bi"]) + nb(enc_kp["bh"]) + 2 * LB * H * 4)

    return pl.pallas_call(
        kernel,
        out_shape=jax.ShapeDtypeStruct((2, LB, H), F32),
        grid_spec=pltpu.PrefetchScalarGridSpec(
            num_scalar_prefetch=0,
            grid=(2,),
            in_specs=[
                pl.BlockSpec((1, LB, E), lambda d: (d, 0, 0)),
                pl.BlockSpec((1, E, H3), lambda d: (d, 0, 0)),
                pl.BlockSpec((1, H, H3), lambda d: (d, 0, 0)),
                pl.BlockSpec((1, 1, H3), lambda d: (d, 0, 0)),
                pl.BlockSpec((1, 1, H3), lambda d: (d, 0, 0)),
            ],
            out_specs=pl.BlockSpec((1, LB, H), lambda d: (d, 0, 0)),
        ),
        compiler_params=pltpu.CompilerParams(
            # On v7x the two directions can land on the two TensorCores; on v5e/v6e this is a
            # plain serial loop, which is why the hoisted input projection above matters.
            dimension_semantics=("parallel",),
            vmem_limit_bytes=16 * 1024 * 1024,
        ),
        cost_estimate=pl.CostEstimate(flops=int(flops), transcendentals=int(transc),
                                      bytes_accessed=int(bytes_acc)),
    )(x_dirs, enc_kp["wi"], enc_kp["wh"], enc_kp["bi"], enc_kp["bh"])


# ------------------------------------------------------------------ fused decoder kernel
def _decoder_kernel(tfm_ref,                                   # scalar-prefetch (SMEM, int32)
                    trg_oh_ref, s0_ref, enc_ref, encp_ref, emb_ref, aws_ref, v_ref,
                    wie_ref, wiw_ref, bi_ref, wh_ref, bh_ref,
                    woh_ref, wow_ref, woe_ref, bo_ref,
                    pred_ref, s_scr, oh_scr, idx_scr):
    """One decode step per grid iteration; everything is VMEM-resident -> no per-step DMA."""
    i = pl.program_id(0)
    B, dH = s_scr.shape
    Vp = oh_scr.shape[1]
    dot = lambda a, b: jnp.dot(a, b, preferred_element_type=F32)

    @pl.when(i == 0)
    def _():
        s_scr[...] = s0_ref[...]
        oh_scr[...] = jnp.zeros_like(oh_scr)
        # argmax iota hoisted: materialized once, reused every step
        idx_scr[...] = lax.broadcasted_iota(jnp.int32, (B, Vp), 1).astype(F32)

    # input token: teacher-forced target one-hot or previous step's greedy one-hot
    tf = (tfm_ref[i] > 0).astype(F32)                             # scalar in {0., 1.}
    inp_oh = tf * trg_oh_ref[i] + (1.0 - tf) * oh_scr[...]        # (B, Vp)
    emb = dot(inp_oh, emb_ref[...])                               # (B, E): gather as a matmul
    s = s_scr[...]                                                # (B, dH)

    # attention (enc @ W_attn + b_attn hoisted into encp_ref -> loop-invariant)
    q = dot(s, aws_ref[...])                                      # (B, dH)
    energy = jnp.tanh(q[:, None, :] + encp_ref[...])              # (B, L, dH)
    att = jnp.sum(energy * v_ref[...].reshape(1, 1, dH), axis=-1)  # (B, L)
    att = att - jnp.max(att, axis=-1, keepdims=True)
    p = jnp.exp(att)
    a = p * pl.reciprocal(jnp.sum(p, axis=-1, keepdims=True), approx=True)   # EUP divide
    # context as a VPU broadcast-multiply + reduce (no degenerate q=1 MXU matmuls)
    wt = jnp.sum(a[:, :, None] * enc_ref[...], axis=1)            # (B, 2*enc_hid)

    # GRU cell: fused [r | z | n] gates, input projection split into two in-place partial dots
    gx = dot(emb, wie_ref[...]) + dot(wt, wiw_ref[...]) + bi_ref[...]   # (B, 3*dH)
    gh = dot(s, wh_ref[...]) + bh_ref[...]                              # (B, 3*dH)
    r = jax.nn.sigmoid(gx[:, 0:dH] + gh[:, 0:dH])
    z = jax.nn.sigmoid(gx[:, dH:2 * dH] + gh[:, dH:2 * dH])
    n = jnp.tanh(gx[:, 2 * dH:] + r * gh[:, 2 * dH:])
    h = (1.0 - z) * n + z * s

    # output projection over [h ; weighted ; embedded] as accumulated partial dots
    # (vocab padded to Vp lanes, lane-dense stores)
    pred = (dot(h, woh_ref[...]) + dot(wt, wow_ref[...])
            + dot(emb, woe_ref[...]) + bo_ref[...])               # (B, Vp)
    pred_ref[i] = pred

    # greedy next token as a one-hot (first max index == argmax semantics)
    idx = idx_scr[...]
    mx = jnp.max(pred, axis=-1, keepdims=True)
    first = jnp.min(jnp.where(pred == mx, idx, float(Vp)), axis=-1, keepdims=True)
    oh_scr[...] = (idx == first).astype(F32)
    s_scr[...] = h


def decoder_fused(tf_flags, trg_oh, s0, enc_b, enc_proj, dec_kp):
    Tm1, B, Vp = trg_oh.shape
    dH = s0.shape[-1]
    L = enc_b.shape[1]
    H2 = enc_b.shape[-1]
    E = dec_kp["emb_pad"].shape[-1]

    # TODO(synk): at real vocab sizes, retire the VPAD trick: tile the output projection over a
    # lane-dense vocab axis with a running (max, argmax) in scratch, and fetch the embedding row
    # via scalar-prefetched token ids instead of the one-hot matmul.
    resident = [trg_oh, s0, enc_b, enc_proj, dec_kp["emb_pad"], dec_kp["attn_ws"], dec_kp["v"],
                dec_kp["wi_e"], dec_kp["wi_w"], dec_kp["bi"], dec_kp["wh"], dec_kp["bh"],
                dec_kp["wo_h"], dec_kp["wo_w"], dec_kp["wo_e"], dec_kp["bo"]]

    def full(a):
        # constant-index resident block (index_map also receives the scalar-prefetch ref)
        # TODO(synk): on v7x mark these with pipeline_mode=pl.Buffered(1) when VMEM gets tight.
        return pl.BlockSpec(a.shape, lambda i, tfm, _nd=a.ndim: (0,) * _nd)

    nb = lambda a: a.size * 4
    flops_step = (2 * B * Vp * E + 2 * B * dH * dH + 2 * B * L * dH + 2 * B * L * H2
                  + 2 * B * E * 3 * dH + 2 * B * H2 * 3 * dH + 2 * B * dH * 3 * dH
                  + 2 * B * (dH + H2 + E) * Vp)
    flops = Tm1 * flops_step
    transc = Tm1 * B * (L * dH + L + 3 * dH)
    bytes_acc = sum(nb(a) for a in resident) + nb(tf_flags) + Tm1 * B * Vp * 4

    return pl.pallas_call(
        _decoder_kernel,
        out_shape=jax.ShapeDtypeStruct((Tm1, B, Vp), F32),
        grid_spec=pltpu.PrefetchScalarGridSpec(
            num_scalar_prefetch=1,                       # tf_flags -> SMEM scalars
            grid=(Tm1,),
            in_specs=[full(a) for a in resident],
            out_specs=pl.BlockSpec((Tm1, B, Vp), lambda i, tfm: (0, 0, 0)),
            scratch_shapes=[pltpu.VMEM((B, dH), F32),    # hidden state
                            pltpu.VMEM((B, Vp), F32),    # previous greedy one-hot
                            pltpu.VMEM((B, Vp), F32)],   # hoisted argmax iota
        ),
        compiler_params=pltpu.CompilerParams(
            dimension_semantics=("arbitrary",),          # strict sequential recurrence
            vmem_limit_bytes=32 * 1024 * 1024,
        ),
        cost_estimate=pl.CostEstimate(flops=int(flops), transcendentals=int(transc),
                                      bytes_accessed=int(bytes_acc)),
    )(tf_flags, *resident)


# ------------------------------------------------------------------ parameters
def init_params(key, src_vocab, trg_vocab, emb_dim, enc_hid, dec_hid):
    ks = jax.random.split(key, 25)
    w = lambda k, shape: (0.1 * jax.random.normal(k, shape)).astype(F32)
    E2 = 2 * enc_hid
    return {
        "emb_src": w(ks[0], (src_vocab, emb_dim)),
        "emb_trg": w(ks[1], (trg_vocab, emb_dim)),
        "enc": {
            "wih_f": w(ks[2], (3, emb_dim, enc_hid)), "whh_f": w(ks[3], (3, enc_hid, enc_hid)),
            "bih_f": w(ks[4], (3, 1, enc_hid)),       "bhh_f": w(ks[5], (3, 1, enc_hid)),
            "wih_b": w(ks[6], (3, emb_dim, enc_hid)), "whh_b": w(ks[7], (3, enc_hid, enc_hid)),
            "bih_b": w(ks[8], (3, 1, enc_hid)),       "bhh_b": w(ks[9], (3, 1, enc_hid)),
            "fc_w": w(ks[10], (E2, dec_hid)),          "fc_b": w(ks[11], (1, dec_hid)),
        },
        "dec": {
            "attn_ws": w(ks[12], (dec_hid, dec_hid)),
            "attn_we": w(ks[13], (E2, dec_hid)),
            "attn_b": w(ks[14], (1, dec_hid)),
            "v": w(ks[15], (1, dec_hid)),
            "wih_e": w(ks[16], (3, emb_dim, dec_hid)),
            "wih_w": w(ks[17], (3, E2, dec_hid)),
            "whh": w(ks[18], (3, dec_hid, dec_hid)),
            "bih": w(ks[19], (3, 1, dec_hid)),
            "bhh": w(ks[20], (3, 1, dec_hid)),
            "wo_h": w(ks[21], (dec_hid, trg_vocab)),
            "wo_w": w(ks[22], (E2, trg_vocab)),
            "wo_e": w(ks[23], (emb_dim, trg_vocab)),
            "bo": w(ks[24], (1, trg_vocab)),
        },
    }


def prepare_kernel_params(params, vpad=VPAD):
    """Kernel weight layout: gates fused to (in, 3H); decoder input/output projections kept as
    separate row-blocks (so the kernel can accumulate partial dots instead of concatenating
    activations along the lane axis); vocab padded to a lane-dense width.  Done once.
    TODO(synk): cast resident weights to bf16 (f32 accumulation) when scaling up; kept f32 here
    to preserve exact greedy-token agreement with the f32 reference at toy sizes."""
    enc, dec = params["enc"], params["dec"]
    fuse_w = lambda w3: jnp.concatenate([w3[0], w3[1], w3[2]], axis=-1)   # (3,in,H) -> (in,3H)
    fuse_b = lambda b3: jnp.concatenate([b3[0], b3[1], b3[2]], axis=-1)   # (3,1,H)  -> (1,3H)

    enc_kp = {
        "wi": jnp.stack([fuse_w(enc["wih_f"]), fuse_w(enc["wih_b"])]),
        "wh": jnp.stack([fuse_w(enc["whh_f"]), fuse_w(enc["whh_b"])]),
        "bi": jnp.stack([fuse_b(enc["bih_f"]), fuse_b(enc["bih_b"])]),
        "bh": jnp.stack([fuse_b(enc["bhh_f"]), fuse_b(enc["bhh_b"])]),
    }

    V = dec["bo"].shape[-1]
    pad_v = lambda w: jnp.pad(w, ((0, 0), (0, vpad - V)))                 # zero-padded columns
    dec_kp = {
        "wi_e": fuse_w(dec["wih_e"]),        # (E, 3*dec_hid)
        "wi_w": fuse_w(dec["wih_w"]),        # (2*enc_hid, 3*dec_hid)
        "bi": fuse_b(dec["bih"]),
        "wh": fuse_w(dec["whh"]),
        "bh": fuse_b(dec["bhh"]),
        "attn_ws": dec["attn_ws"],
        "v": dec["v"],
        "wo_h": pad_v(dec["wo_h"]),
        "wo_w": pad_v(dec["wo_w"]),
        "wo_e": pad_v(dec["wo_e"]),
        "bo": jnp.concatenate([dec["bo"], jnp.full((1, vpad - V), NEG_BIG, F32)], axis=-1),
        "emb_pad": jnp.pad(params["emb_trg"], ((0, vpad - V), (0, 0))),   # (Vp, E)
    }
    return {"enc": enc_kp, "dec": dec_kp}


# ------------------------------------------------------------------ forward (kernel path)
def seq2seq_forward(params, kp, src, trg, teacher_forcing_ratio=0.5, tf_key=None):
    """Mirrors Seq2Seq.forward: outputs[0] stays zero; steps 1..T-1 come from the fused decoder."""
    L, B = src.shape
    T = trg.shape[0]
    V = params["dec"]["bo"].shape[-1]
    enc_p, dec_p = params["enc"], params["dec"]

    # pad batch to a full sublane group -> unmasked stores, non-degenerate MXU rows
    Bp = max(SUBLANE, ((B + SUBLANE - 1) // SUBLANE) * SUBLANE)

    # ---- encoder: one kernel, direction axis on the grid ----
    emb_src = jnp.take(params["emb_src"], src, axis=0)                    # (L, B, E)
    emb_src = jnp.pad(emb_src, ((0, 0), (0, Bp - B), (0, 0)))             # (L, Bp, E)
    E = emb_src.shape[-1]
    x_dirs = jnp.stack([emb_src, jnp.flip(emb_src, axis=0)], axis=0)      # (2, L, Bp, E)
    x_dirs = x_dirs.reshape(2, L * Bp, E)

    states = encoder_bigru(x_dirs, kp["enc"], L, Bp)                      # (2, L*Bp, H)
    H = states.shape[-1]
    states = states.reshape(2, L, Bp, H)
    out_f, out_b = states[0], jnp.flip(states[1], axis=0)
    enc_b = jnp.transpose(jnp.concatenate([out_f, out_b], axis=-1), (1, 0, 2))   # (Bp, L, 2H)
    # final hidden states read straight from the state sequence (no extra kernel output)
    hcat = jnp.concatenate([states[0, L - 1], states[1, L - 1]], axis=-1)
    s0 = jnp.tanh(hcat @ enc_p["fc_w"] + enc_p["fc_b"])                   # (Bp, dec_hid)

    # loop-invariant attention projection, hoisted out of the decode loop
    enc_proj = jnp.einsum('blh,hd->bld', enc_b, dec_p["attn_we"]) + dec_p["attn_b"][None]

    # ---- teacher-forcing schedule (jit-safe: no host-side bool()) ----
    # TODO(synk): random.random() per-step teacher forcing is host-side RNG; replaced with
    # deterministic jax.random draws shared by the kernel path and the pure-JAX reference.
    if tf_key is None:
        tf_key = jax.random.PRNGKey(1)
    tf_draws = jax.random.uniform(tf_key, (T,))
    tf_flags = (tf_draws[:T - 1] < teacher_forcing_ratio).astype(jnp.int32)
    tf_flags = tf_flags.at[0].set(1)              # first decoder input is always trg[0]

    Vp = kp["dec"]["emb_pad"].shape[0]
    trg_p = jnp.pad(trg[:T - 1], ((0, 0), (0, Bp - B)))
    trg_oh = jax.nn.one_hot(trg_p, Vp, dtype=F32)                         # (T-1, Bp, Vp)

    # ---- decoder: one kernel for the whole decode loop ----
    preds = decoder_fused(tf_flags, trg_oh, s0, enc_b, enc_proj, kp["dec"])   # (T-1, Bp, Vp)
    outputs = jnp.concatenate([jnp.zeros((1, B, V), F32), preds[:, :B, :V]], axis=0)
    return outputs                                                        # (T, B, V)


# ------------------------------------------------------------------ pure-JAX reference
def reference_forward(params, src, trg, teacher_forcing_ratio, tf_key):
    enc_p, dec_p = params["enc"], params["dec"]
    L, B = src.shape
    T = trg.shape[0]
    V = dec_p["bo"].shape[-1]
    H = enc_p["whh_f"].shape[-1]

    def gru_cell(x, h, wi, wh, bi, bh):
        r = jax.nn.sigmoid(x @ wi[0] + bi[0] + h @ wh[0] + bh[0])
        z = jax.nn.sigmoid(x @ wi[1] + bi[1] + h @ wh[1] + bh[1])
        n = jnp.tanh(x @ wi[2] + bi[2] + r * (h @ wh[2] + bh[2]))
        return (1.0 - z) * n + z * h

    emb_src = params["emb_src"][src]
    hf = jnp.zeros((B, H), F32)
    hb = jnp.zeros((B, H), F32)
    outs_f, outs_b = [], [None] * L
    for t in range(L):
        hf = gru_cell(emb_src[t], hf, enc_p["wih_f"], enc_p["whh_f"], enc_p["bih_f"], enc_p["bhh_f"])
        outs_f.append(hf)
    for t in range(L - 1, -1, -1):
        hb = gru_cell(emb_src[t], hb, enc_p["wih_b"], enc_p["whh_b"], enc_p["bih_b"], enc_p["bhh_b"])
        outs_b[t] = hb
    enc_output = jnp.stack([jnp.concatenate([outs_f[t], outs_b[t]], -1) for t in range(L)], 0)
    s = jnp.tanh(jnp.concatenate([outs_f[-1], outs_b[0]], -1) @ enc_p["fc_w"] + enc_p["fc_b"])

    enc_b = jnp.transpose(enc_output, (1, 0, 2))                  # (B, L, 2H)
    tf_draws = jax.random.uniform(tf_key, (T,))
    outputs = [jnp.zeros((B, V), F32)]
    dec_input = trg[0]
    for t in range(1, T):
        emb = params["emb_trg"][dec_input]
        energy = jnp.tanh((s @ dec_p["attn_ws"])[:, None, :]
                          + jnp.einsum("ble,ed->bld", enc_b, dec_p["attn_we"])
                          + dec_p["attn_b"])
        att = jnp.sum(energy * dec_p["v"], axis=-1)               # (B, L)
        a = jax.nn.softmax(att, axis=-1)
        weighted = jnp.sum(a[:, :, None] * enc_b, axis=1)         # (B, 2H)

        gx = lambda k: emb @ dec_p["wih_e"][k] + weighted @ dec_p["wih_w"][k] + dec_p["bih"][k]
        gh = lambda k: s @ dec_p["whh"][k] + dec_p["bhh"][k]
        r = jax.nn.sigmoid(gx(0) + gh(0))
        z = jax.nn.sigmoid(gx(1) + gh(1))
        n = jnp.tanh(gx(2) + r * gh(2))
        s = (1.0 - z) * n + z * s

        pred = s @ dec_p["wo_h"] + weighted @ dec_p["wo_w"] + emb @ dec_p["wo_e"] + dec_p["bo"]
        outputs.append(pred)
        top1 = jnp.argmax(pred, axis=1)
        teacher_force = bool(tf_draws[t] < teacher_forcing_ratio)
        dec_input = trg[t] if teacher_force else top1
    return jnp.stack(outputs, axis=0)


# ------------------------------------------------------------------ main
if __name__ == "__main__":
    SRC_VOCAB, TRG_VOCAB = 20, 24
    EMB, ENC_H, DEC_H = 16, 32, 32
    SRC_LEN, TRG_LEN, BATCH = 7, 8, 2

    key = jax.random.PRNGKey(0)
    pkey, skey, tkey = jax.random.split(key, 3)
    params = init_params(pkey, SRC_VOCAB, TRG_VOCAB, EMB, ENC_H, DEC_H)
    kp = prepare_kernel_params(params)
    src = jax.random.randint(skey, (SRC_LEN, BATCH), 0, SRC_VOCAB, dtype=jnp.int32)
    trg = jax.random.randint(tkey, (TRG_LEN, BATCH), 0, TRG_VOCAB, dtype=jnp.int32)
    tf_key = jax.random.PRNGKey(1)

    fwd = jax.jit(seq2seq_forward)
    out = fwd(params, kp, src, trg, 0.5, tf_key)
    out = jax.block_until_ready(out)

    ref = reference_forward(params, src, trg, 0.5, tf_key)
    assert out.shape == (TRG_LEN, BATCH, TRG_VOCAB)
    err = float(jnp.max(jnp.abs(out - ref)))
    # tolerance slightly loosened to cover the approx-reciprocal softmax denominator
    assert err < 5e-3, f"mismatch vs pure-JAX reference: {err}"
    print("KERNEL_OK")
</pallas_src>

<mosaic_0001>
module attributes {stable_mosaic.version = 11 : i64} {
  func.func @kernel(%arg0: i32, %arg1: memref<1x56x16xf32, #tpu.memory_space<vmem>>, %arg2: memref<1x16x96xf32, #tpu.memory_space<vmem>>, %arg3: memref<1x32x96xf32, #tpu.memory_space<vmem>>, %arg4: memref<1x1x96xf32, #tpu.memory_space<vmem>>, %arg5: memref<1x1x96xf32, #tpu.memory_space<vmem>>, %arg6: memref<1x56x32xf32, #tpu.memory_space<vmem>>) attributes {dimension_semantics = [#tpu.dimension_semantics<parallel>], iteration_bounds = array<i64: 2>, scalar_prefetch = 0 : i64, scratch_operands = 0 : i64, tpu.core_type = #tpu.core_type<tc>, window_params = [{transform_indices = @transform_0, window_bounds = array<i64: 1, 56, 16>}, {transform_indices = @transform_1, window_bounds = array<i64: 1, 16, 96>}, {transform_indices = @transform_2, window_bounds = array<i64: 1, 32, 96>}, {transform_indices = @transform_3, window_bounds = array<i64: 1, 1, 96>}, {transform_indices = @transform_4, window_bounds = array<i64: 1, 1, 96>}, {transform_indices = @transform_5, window_bounds = array<i64: 1, 56, 32>}]} {
    %c0 = arith.constant 0 : index
    %c0_0 = arith.constant 0 : index
    %c0_1 = arith.constant 0 : index
    %0 = vector.load %arg2[%c0, %c0_0, %c0_1] : memref<1x16x96xf32, #tpu.memory_space<vmem>>, vector<1x16x96xf32>
    %1 = vector.shape_cast %0 : vector<1x16x96xf32> to vector<16x96xf32>
    %c0_2 = arith.constant 0 : index
    %c0_3 = arith.constant 0 : index
    %c0_4 = arith.constant 0 : index
    %2 = vector.load %arg3[%c0_2, %c0_3, %c0_4] : memref<1x32x96xf32, #tpu.memory_space<vmem>>, vector<1x32x96xf32>
    %3 = vector.shape_cast %2 : vector<1x32x96xf32> to vector<32x96xf32>
    %c0_5 = arith.constant 0 : index
    %c0_6 = arith.constant 0 : index
    %c0_7 = arith.constant 0 : index
    %4 = vector.load %arg4[%c0_5, %c0_6, %c0_7] : memref<1x1x96xf32, #tpu.memory_space<vmem>>, vector<1x1x96xf32>
    %5 = vector.shape_cast %4 : vector<1x1x96xf32> to vector<1x96xf32>
    %c0_8 = arith.constant 0 : index
    %c0_9 = arith.constant 0 : index
    %c0_10 = arith.constant 0 : index
    %6 = vector.load %arg5[%c0_8, %c0_9, %c0_10] : memref<1x1x96xf32, #tpu.memory_space<vmem>>, vector<1x1x96xf32>
    %7 = vector.shape_cast %6 : vector<1x1x96xf32> to vector<1x96xf32>
    %c0_11 = arith.constant 0 : index
    %c0_12 = arith.constant 0 : index
    %c0_13 = arith.constant 0 : index
    %8 = vector.load %arg1[%c0_11, %c0_12, %c0_13] : memref<1x56x16xf32, #tpu.memory_space<vmem>>, vector<1x56x16xf32>
    %9 = vector.shape_cast %8 : vector<1x56x16xf32> to vector<56x16xf32>
    %cst = arith.constant dense<0.000000e+00> : vector<56x96xf32>
    %10 = tpu.matmul %9, %1, %cst {dimension_numbers = #tpu.dot_dimension_numbers<[1], [0], [0], [1], [0, 0, 1, 1], [], []>} : vector<56x16xf32>, vector<16x96xf32>, vector<56x96xf32> -> vector<56x96xf32>
    %11 = vector.broadcast %5 : vector<1x96xf32> to vector<56x96xf32>
    %12 = arith.addf %10, %11 : vector<56x96xf32>
    %cst_14 = arith.constant 0.000000e+00 : f32
    %13 = vector.broadcast %cst_14 : f32 to vector<8x32xf32>
    %14 = vector.extract_strided_slice %12 {offsets = [0, 0], sizes = [8, 96], strides = [1, 1]} : vector<56x96xf32> to vector<8x96xf32>
    %cst_15 = arith.constant dense<0.000000e+00> : vector<8x96xf32>
    %15 = tpu.matmul %13, %3, %cst_15 {dimension_numbers = #tpu.dot_dimension_numbers<[1], [0], [0], [1], [0, 0, 1, 1], [], []>} : vector<8x32xf32>, vector<32x96xf32>, vector<8x96xf32> -> vector<8x96xf32>
    %16 = vector.broadcast %7 : vector<1x96xf32> to vector<8x96xf32>
    %17 = arith.addf %15, %16 : vector<8x96xf32>
    %18 = vector.extract_strided_slice %14 {offsets = [0, 0], sizes = [8, 32], strides = [1, 1]} : vector<8x96xf32> to vector<8x32xf32>
    %19 = vector.extract_strided_slice %17 {offsets = [0, 0], sizes = [8, 32], strides = [1, 1]} : vector<8x96xf32> to vector<8x32xf32>
    %20 = arith.addf %18, %19 : vector<8x32xf32>
    %21 = arith.negf %20 : vector<8x32xf32>
    %22 = math.exp %21 : vector<8x32xf32>
    %cst_16 = arith.constant 1.000000e+00 : f32
    %23 = vector.broadcast %cst_16 : f32 to vector<8x32xf32>
    %24 = arith.addf %23, %22 : vector<8x32xf32>
    %25 = arith.divf %23, %24 : vector<8x32xf32>
    %26 = vector.extract_strided_slice %14 {offsets = [0, 32], sizes = [8, 32], strides = [1, 1]} : vector<8x96xf32> to vector<8x32xf32>
    %27 = vector.extract_strided_slice %17 {offsets = [0, 32], sizes = [8, 32], strides = [1, 1]} : vector<8x96xf32> to vector<8x32xf32>
    %28 = arith.addf %26, %27 : vector<8x32xf32>
    %29 = arith.negf %28 : vector<8x32xf32>
    %30 = math.exp %29 : vector<8x32xf32>
    %cst_17 = arith.constant 1.000000e+00 : f32
    %31 = vector.broadcast %cst_17 : f32 to vector<8x32xf32>
    %32 = arith.addf %31, %30 : vector<8x32xf32>
    %33 = arith.divf %31, %32 : vector<8x32xf32>
    %34 = vector.extract_strided_slice %14 {offsets = [0, 64], sizes = [8, 32], strides = [1, 1]} : vector<8x96xf32> to vector<8x32xf32>
    %35 = vector.extract_strided_slice %17 {offsets = [0, 64], sizes = [8, 32], strides = [1, 1]} : vector<8x96xf32> to vector<8x32xf32>
    %36 = arith.mulf %25, %35 : vector<8x32xf32>
    %37 = arith.addf %34, %36 : vector<8x32xf32>
    %38 = math.tanh %37 : vector<8x32xf32>
    %cst_18 = arith.constant 1.000000e+00 : f32
    %39 = vector.broadcast %cst_18 : f32 to vector<8x32xf32>
    %40 = arith.subf %39, %33 : vector<8x32xf32>
    %41 = arith.mulf %40, %38 : vector<8x32xf32>
    %42 = arith.mulf %33, %13 : vector<8x32xf32>
    %43 = arith.addf %41, %42 : vector<8x32xf32>
    %c0_19 = arith.constant 0 : index
    %c0_20 = arith.constant 0 : index
    %c0_21 = arith.constant 0 : index
    %44 = vector.load %arg6[%c0_19, %c0_20, %c0_21] : memref<1x56x32xf32, #tpu.memory_space<vmem>>, vector<1x8x32xf32>
    %45 = vector.shape_cast %44 : vector<1x8x32xf32> to vector<8x32xf32>
    %46 = vector.shape_cast %43 : vector<8x32xf32> to vector<1x8x32xf32>
    tpu.vector_store %arg6[%c0_19, %c0_20, %c0_21], %46 {strides = array<i32>} : memref<1x56x32xf32, #tpu.memory_space<vmem>>, vector<1x8x32xf32>,
    %47 = vector.extract_strided_slice %12 {offsets = [8, 0], sizes = [8, 96], strides = [1, 1]} : vector<56x96xf32> to vector<8x96xf32>
    %cst_22 = arith.constant dense<0.000000e+00> : vector<8x96xf32>
    %48 = tpu.matmul %43, %3, %cst_22 {dimension_numbers = #tpu.dot_dimension_numbers<[1], [0], [0], [1], [0, 0, 1, 1], [], []>} : vector<8x32xf32>, vector<32x96xf32>, vector<8x96xf32> -> vector<8x96xf32>
    %49 = vector.broadcast %7 : vector<1x96xf32> to vector<8x96xf32>
    %50 = arith.addf %48, %49 : vector<8x96xf32>
    %51 = vector.extract_strided_slice %47 {offsets = [0, 0], sizes = [8, 32], strides = [1, 1]} : vector<8x96xf32> to vector<8x32xf32>
    %52 = vector.extract_strided_slice %50 {offsets = [0, 0], sizes = [8, 32], strides = [1, 1]} : vector<8x96xf32> to vector<8x32xf32>
    %53 = arith.addf %51, %52 : vector<8x32xf32>
    %54 = arith.negf %53 : vector<8x32xf32>
    %55 = math.exp %54 : vector<8x32xf32>
    %cst_23 = arith.constant 1.000000e+00 : f32
    %56 = vector.broadcast %cst_23 : f32 to vector<8x32xf32>
    %57 = arith.addf %56, %55 : vector<8x32xf32>
    %58 = arith.divf %56, %57 : vector<8x32xf32>
    %59 = vector.extract_strided_slice %47 {offsets = [0, 32], sizes = [8, 32], strides = [1, 1]} : vector<8x96xf32> to vector<8x32xf32>
    %60 = vector.extract_strided_slice %50 {offsets = [0, 32], sizes = [8, 32], strides = [1, 1]} : vector<8x96xf32> to vector<8x32xf32>
    %61 = arith.addf %59, %60 : vector<8x32xf32>
    %62 = arith.negf %61 : vector<8x32xf32>
    %63 = math.exp %62 : vector<8x32xf32>
    %cst_24 = arith.constant 1.000000e+00 : f32
    %64 = vector.broadcast %cst_24 : f32 to vector<8x32xf32>
    %65 = arith.addf %64, %63 : vector<8x32xf32>
    %66 = arith.divf %64, %65 : vector<8x32xf32>
    %67 = vector.extract_strided_slice %47 {offsets = [0, 64], sizes = [8, 32], strides = [1, 1]} : vector<8x96xf32> to vector<8x32xf32>
    %68 = vector.extract_strided_slice %50 {offsets = [0, 64], sizes = [8, 32], strides = [1, 1]} : vector<8x96xf32> to vector<8x32xf32>
    %69 = arith.mulf %58, %68 : vector<8x32xf32>
    %70 = arith.addf %67, %69 : vector<8x32xf32>
    %71 = math.tanh %70 : vector<8x32xf32>
    %cst_25 = arith.constant 1.000000e+00 : f32
    %72 = vector.broadcast %cst_25 : f32 to vector<8x32xf32>
    %73 = arith.subf %72, %66 : vector<8x32xf32>
    %74 = arith.mulf %73, %71 : vector<8x32xf32>
    %75 = arith.mulf %66, %43 : vector<8x32xf32>
    %76 = arith.addf %74, %75 : vector<8x32xf32>
    %c0_26 = arith.constant 0 : index
    %c8 = arith.constant 8 : index
    %c0_27 = arith.constant 0 : index
    %77 = vector.load %arg6[%c0_26, %c8, %c0_27] : memref<1x56x32xf32, #tpu.memory_space<vmem>>, vector<1x8x32xf32>
    %78 = vector.shape_cast %77 : vector<1x8x32xf32> to vector<8x32xf32>
    %79 = vector.shape_cast %76 : vector<8x32xf32> to vector<1x8x32xf32>
    tpu.vector_store %arg6[%c0_26, %c8, %c0_27], %79 {strides = array<i32>} : memref<1x56x32xf32, #tpu.memory_space<vmem>>, vector<1x8x32xf32>,
    %80 = vector.extract_strided_slice %12 {offsets = [16, 0], sizes = [8, 96], strides = [1, 1]} : vector<56x96xf32> to vector<8x96xf32>
    %cst_28 = arith.constant dense<0.000000e+00> : vector<8x96xf32>
    %81 = tpu.matmul %76, %3, %cst_28 {dimension_numbers = #tpu.dot_dimension_numbers<[1], [0], [0], [1], [0, 0, 1, 1], [], []>} : vector<8x32xf32>, vector<32x96xf32>, vector<8x96xf32> -> vector<8x96xf32>
    %82 = vector.broadcast %7 : vector<1x96xf32> to vector<8x96xf32>
    %83 = arith.addf %81, %82 : vector<8x96xf32>
    %84 = vector.extract_strided_slice %80 {offsets = [0, 0], sizes = [8, 32], strides = [1, 1]} : vector<8x96xf32> to vector<8x32xf32>
    %85 = vector.extract_strided_slice %83 {offsets = [0, 0], sizes = [8, 32], strides = [1, 1]} : vector<8x96xf32> to vector<8x32xf32>
    %86 = arith.addf %84, %85 : vector<8x32xf32>
    %87 = arith.negf %86 : vector<8x32xf32>
    %88 = math.exp %87 : vector<8x32xf32>
    %cst_29 = arith.constant 1.000000e+00 : f32
    %89 = vector.broadcast %cst_29 : f32 to vector<8x32xf32>
    %90 = arith.addf %89, %88 : vector<8x32xf32>
    %91 = arith.divf %89, %90 : vector<8x32xf32>
    %92 = vector.extract_strided_slice %80 {offsets = [0, 32], sizes = [8, 32], strides = [1, 1]} : vector<8x96xf32> to vector<8x32xf32>
    %93 = vector.extract_strided_slice %83 {offsets = [0, 32], sizes = [8, 32], strides = [1, 1]} : vector<8x96xf32> to vector<8x32xf32>
    %94 = arith.addf %92, %93 : vector<8x32xf32>
    %95 = arith.negf %94 : vector<8x32xf32>
    %96 = math.exp %95 : vector<8x32xf32>
    %cst_30 = arith.constant 1.000000e+00 : f32
    %97 = vector.broadcast %cst_30 : f32 to vector<8x32xf32>
    %98 = arith.addf %97, %96 : vector<8x32xf32>
    %99 = arith.divf %97, %98 : vector<8x32xf32>
    %100 = vector.extract_strided_slice %80 {offsets = [0, 64], sizes = [8, 32], strides = [1, 1]} : vector<8x96xf32> to vector<8x32xf32>
    %101 = vector.extract_strided_slice %83 {offsets = [0, 64], sizes = [8, 32], strides = [1, 1]} : vector<8x96xf32> to vector<8x32xf32>
    %102 = arith.mulf %91, %101 : vector<8x32xf32>
    %103 = arith.addf %100, %102 : vector<8x32xf32>
    %104 = math.tanh %103 : vector<8x32xf32>
    %cst_31 = arith.constant 1.000000e+00 : f32
    %105 = vector.broadcast %cst_31 : f32 to vector<8x32xf32>
    %106 = arith.subf %105, %99 : vector<8x32xf32>
    %107 = arith.mulf %106, %104 : vector<8x32xf32>
    %108 = arith.mulf %99, %76 : vector<8x32xf32>
    %109 = arith.addf %107, %108 : vector<8x32xf32>
    %c0_32 = arith.constant 0 : index
    %c16 = arith.constant 16 : index
    %c0_33 = arith.constant 0 : index
    %110 = vector.load %arg6[%c0_32, %c16, %c0_33] : memref<1x56x32xf32, #tpu.memory_space<vmem>>, vector<1x8x32xf32>
    %111 = vector.shape_cast %110 : vector<1x8x32xf32> to vector<8x32xf32>
    %112 = vector.shape_cast %109 : vector<8x32xf32> to vector<1x8x32xf32>
    tpu.vector_store %arg6[%c0_32, %c16, %c0_33], %112 {strides = array<i32>} : memref<1x56x32xf32, #tpu.memory_space<vmem>>, vector<1x8x32xf32>,
    %113 = vector.extract_strided_slice %12 {offsets = [24, 0], sizes = [8, 96], strides = [1, 1]} : vector<56x96xf32> to vector<8x96xf32>
    %cst_34 = arith.constant dense<0.000000e+00> : vector<8x96xf32>
    %114 = tpu.matmul %109, %3, %cst_34 {dimension_numbers = #tpu.dot_dimension_numbers<[1], [0], [0], [1], [0, 0, 1, 1], [], []>} : vector<8x32xf32>, vector<32x96xf32>, vector<8x96xf32> -> vector<8x96xf32>
    %115 = vector.broadcast %7 : vector<1x96xf32> to vector<8x96xf32>
    %116 = arith.addf %114, %115 : vector<8x96xf32>
    %117 = vector.extract_strided_slice %113 {offsets = [0, 0], sizes = [8, 32], strides = [1, 1]} : vector<8x96xf32> to vector<8x32xf32>
    %118 = vector.extract_strided_slice %116 {offsets = [0, 0], sizes = [8, 32], strides = [1, 1]} : vector<8x96xf32> to vector<8x32xf32>
    %119 = arith.addf %117, %118 : vector<8x32xf32>
    %120 = arith.negf %119 : vector<8x32xf32>
    %121 = math.exp %120 : vector<8x32xf32>
    %cst_35 = arith.constant 1.000000e+00 : f32
    %122 = vector.broadcast %cst_35 : f32 to vector<8x32xf32>
    %123 = arith.addf %122, %121 : vector<8x32xf32>
    %124 = arith.divf %122, %123 : vector<8x32xf32>
    %125 = vector.extract_strided_slice %113 {offsets = [0, 32], sizes = [8, 32], strides = [1, 1]} : vector<8x96xf32> to vector<8x32xf32>
    %126 = vector.extract_strided_slice %116 {offsets = [0, 32], sizes = [8, 32], strides = [1, 1]} : vector<8x96xf32> to vector<8x32xf32>
    %127 = arith.addf %125, %126 : vector<8x32xf32>
    %128 = arith.negf %127 : vector<8x32xf32>
    %129 = math.exp %128 : vector<8x32xf32>
    %cst_36 = arith.constant 1.000000e+00 : f32
    %130 = vector.broadcast %cst_36 : f32 to vector<8x32xf32>
    %131 = arith.addf %130, %129 : vector<8x32xf32>
    %132 = arith.divf %130, %131 : vector<8x32xf32>
    %133 = vector.extract_strided_slice %113 {offsets = [0, 64], sizes = [8, 32], strides = [1, 1]} : vector<8x96xf32> to vector<8x32xf32>
    %134 = vector.extract_strided_slice %116 {offsets = [0, 64], sizes = [8, 32], strides = [1, 1]} : vector<8x96xf32> to vector<8x32xf32>
    %135 = arith.mulf %124, %134 : vector<8x32xf32>
    %136 = arith.addf %133, %135 : vector<8x32xf32>
    %137 = math.tanh %136 : vector<8x32xf32>
    %cst_37 = arith.constant 1.000000e+00 : f32
    %138 = vector.broadcast %cst_37 : f32 to vector<8x32xf32>
    %139 = arith.subf %138, %132 : vector<8x32xf32>
    %140 = arith.mulf %139, %137 : vector<8x32xf32>
    %141 = arith.mulf %132, %109 : vector<8x32xf32>
    %142 = arith.addf %140, %141 : vector<8x32xf32>
    %c0_38 = arith.constant 0 : index
    %c24 = arith.constant 24 : index
    %c0_39 = arith.constant 0 : index
    %143 = vector.load %arg6[%c0_38, %c24, %c0_39] : memref<1x56x32xf32, #tpu.memory_space<vmem>>, vector<1x8x32xf32>
    %144 = vector.shape_cast %143 : vector<1x8x32xf32> to vector<8x32xf32>
    %145 = vector.shape_cast %142 : vector<8x32xf32> to vector<1x8x32xf32>
    tpu.vector_store %arg6[%c0_38, %c24, %c0_39], %145 {strides = array<i32>} : memref<1x56x32xf32, #tpu.memory_space<vmem>>, vector<1x8x32xf32>,
    %146 = vector.extract_strided_slice %12 {offsets = [32, 0], sizes = [8, 96], strides = [1, 1]} : vector<56x96xf32> to vector<8x96xf32>
    %cst_40 = arith.constant dense<0.000000e+00> : vector<8x96xf32>
    %147 = tpu.matmul %142, %3, %cst_40 {dimension_numbers = #tpu.dot_dimension_numbers<[1], [0], [0], [1], [0, 0, 1, 1], [], []>} : vector<8x32xf32>, vector<32x96xf32>, vector<8x96xf32> -> vector<8x96xf32>
    %148 = vector.broadcast %7 : vector<1x96xf32> to vector<8x96xf32>
    %149 = arith.addf %147, %148 : vector<8x96xf32>
    %150 = vector.extract_strided_slice %146 {offsets = [0, 0], sizes = [8, 32], strides = [1, 1]} : vector<8x96xf32> to vector<8x32xf32>
    %151 = vector.extract_strided_slice %149 {offsets = [0, 0], sizes = [8, 32], strides = [1, 1]} : vector<8x96xf32> to vector<8x32xf32>
    %152 = arith.addf %150, %151 : vector<8x32xf32>
    %153 = arith.negf %152 : vector<8x32xf32>
    %154 = math.exp %153 : vector<8x32xf32>
    %cst_41 = arith.constant 1.000000e+00 : f32
    %155 = vector.broadcast %cst_41 : f32 to vector<8x32xf32>
    %156 = arith.addf %155, %154 : vector<8x32xf32>
    %157 = arith.divf %155, %156 : vector<8x32xf32>
    %158 = vector.extract_strided_slice %146 {offsets = [0, 32], sizes = [8, 32], strides = [1, 1]} : vector<8x96xf32> to vector<8x32xf32>
    %159 = vector.extract_strided_slice %149 {offsets = [0, 32], sizes = [8, 32], strides = [1, 1]} : vector<8x96xf32> to vector<8x32xf32>
    %160 = arith.addf %158, %159 : vector<8x32xf32>
    %161 = arith.negf %160 : vector<8x32xf32>
    %162 = math.exp %161 : vector<8x32xf32>
    %cst_42 = arith.constant 1.000000e+00 : f32
    %163 = vector.broadcast %cst_42 : f32 to vector<8x32xf32>
    %164 = arith.addf %163, %162 : vector<8x32xf32>
    %165 = arith.divf %163, %164 : vector<8x32xf32>
    %166 = vector.extract_strided_slice %146 {offsets = [0, 64], sizes = [8, 32], strides = [1, 1]} : vector<8x96xf32> to vector<8x32xf32>
    %167 = vector.extract_strided_slice %149 {offsets = [0, 64], sizes = [8, 32], strides = [1, 1]} : vector<8x96xf32> to vector<8x32xf32>
    %168 = arith.mulf %157, %167 : vector<8x32xf32>
    %169 = arith.addf %166, %168 : vector<8x32xf32>
    %170 = math.tanh %169 : vector<8x32xf32>
    %cst_43 = arith.constant 1.000000e+00 : f32
    %171 = vector.broadcast %cst_43 : f32 to vector<8x32xf32>
    %172 = arith.subf %171, %165 : vector<8x32xf32>
    %173 = arith.mulf %172, %170 : vector<8x32xf32>
    %174 = arith.mulf %165, %142 : vector<8x32xf32>
    %175 = arith.addf %173, %174 : vector<8x32xf32>
    %c0_44 = arith.constant 0 : index
    %c32 = arith.constant 32 : index
    %c0_45 = arith.constant 0 : index
    %176 = vector.load %arg6[%c0_44, %c32, %c0_45] : memref<1x56x32xf32, #tpu.memory_space<vmem>>, vector<1x8x32xf32>
    %177 = vector.shape_cast %176 : vector<1x8x32xf32> to vector<8x32xf32>
    %178 = vector.shape_cast %175 : vector<8x32xf32> to vector<1x8x32xf32>
    tpu.vector_store %arg6[%c0_44, %c32, %c0_45], %178 {strides = array<i32>} : memref<1x56x32xf32, #tpu.memory_space<vmem>>, vector<1x8x32xf32>,
    %179 = vector.extract_strided_slice %12 {offsets = [40, 0], sizes = [8, 96], strides = [1, 1]} : vector<56x96xf32> to vector<8x96xf32>
    %cst_46 = arith.constant dense<0.000000e+00> : vector<8x96xf32>
    %180 = tpu.matmul %175, %3, %cst_46 {dimension_numbers = #tpu.dot_dimension_numbers<[1], [0], [0], [1], [0, 0, 1, 1], [], []>} : vector<8x32xf32>, vector<32x96xf32>, vector<8x96xf32> -> vector<8x96xf32>
    %181 = vector.broadcast %7 : vector<1x96xf32> to vector<8x96xf32>
    %182 = arith.addf %180, %181 : vector<8x96xf32>
    %183 = vector.extract_strided_slice %179 {offsets = [0, 0], sizes = [8, 32], strides = [1, 1]} : vector<8x96xf32> to vector<8x32xf32>
    %184 = vector.extract_strided_slice %182 {offsets = [0, 0], sizes = [8, 32], strides = [1, 1]} : vector<8x96xf32> to vector<8x32xf32>
    %185 = arith.addf %183, %184 : vector<8x32xf32>
    %186 = arith.negf %185 : vector<8x32xf32>
    %187 = math.exp %186 : vector<8x32xf32>
    %cst_47 = arith.constant 1.000000e+00 : f32
    %188 = vector.broadcast %cst_47 : f32 to vector<8x32xf32>
    %189 = arith.addf %188, %187 : vector<8x32xf32>
    %190 = arith.divf %188, %189 : vector<8x32xf32>
    %191 = vector.extract_strided_slice %179 {offsets = [0, 32], sizes = [8, 32], strides = [1, 1]} : vector<8x96xf32> to vector<8x32xf32>
    %192 = vector.extract_strided_slice %182 {offsets = [0, 32], sizes = [8, 32], strides = [1, 1]} : vector<8x96xf32> to vector<8x32xf32>
    %193 = arith.addf %191, %192 : vector<8x32xf32>
    %194 = arith.negf %193 : vector<8x32xf32>
    %195 = math.exp %194 : vector<8x32xf32>
    %cst_48 = arith.constant 1.000000e+00 : f32
    %196 = vector.broadcast %cst_48 : f32 to vector<8x32xf32>
    %197 = arith.addf %196, %195 : vector<8x32xf32>
    %198 = arith.divf %196, %197 : vector<8x32xf32>
    %199 = vector.extract_strided_slice %179 {offsets = [0, 64], sizes = [8, 32], strides = [1, 1]} : vector<8x96xf32> to vector<8x32xf32>
    %200 = vector.extract_strided_slice %182 {offsets = [0, 64], sizes = [8, 32], strides = [1, 1]} : vector<8x96xf32> to vector<8x32xf32>
    %201 = arith.mulf %190, %200 : vector<8x32xf32>
    %202 = arith.addf %199, %201 : vector<8x32xf32>
    %203 = math.tanh %202 : vector<8x32xf32>
    %cst_49 = arith.constant 1.000000e+00 : f32
    %204 = vector.broadcast %cst_49 : f32 to vector<8x32xf32>
    %205 = arith.subf %204, %198 : vector<8x32xf32>
    %206 = arith.mulf %205, %203 : vector<8x32xf32>
    %207 = arith.mulf %198, %175 : vector<8x32xf32>
    %208 = arith.addf %206, %207 : vector<8x32xf32>
    %c0_50 = arith.constant 0 : index
    %c40 = arith.constant 40 : index
    %c0_51 = arith.constant 0 : index
    %209 = vector.load %arg6[%c0_50, %c40, %c0_51] : memref<1x56x32xf32, #tpu.memory_space<vmem>>, vector<1x8x32xf32>
    %210 = vector.shape_cast %209 : vector<1x8x32xf32> to vector<8x32xf32>
    %211 = vector.shape_cast %208 : vector<8x32xf32> to vector<1x8x32xf32>
    tpu.vector_store %arg6[%c0_50, %c40, %c0_51], %211 {strides = array<i32>} : memref<1x56x32xf32, #tpu.memory_space<vmem>>, vector<1x8x32xf32>,
    %212 = vector.extract_strided_slice %12 {offsets = [48, 0], sizes = [8, 96], strides = [1, 1]} : vector<56x96xf32> to vector<8x96xf32>
    %cst_52 = arith.constant dense<0.000000e+00> : vector<8x96xf32>
    %213 = tpu.matmul %208, %3, %cst_52 {dimension_numbers = #tpu.dot_dimension_numbers<[1], [0], [0], [1], [0, 0, 1, 1], [], []>} : vector<8x32xf32>, vector<32x96xf32>, vector<8x96xf32> -> vector<8x96xf32>
    %214 = vector.broadcast %7 : vector<1x96xf32> to vector<8x96xf32>
    %215 = arith.addf %213, %214 : vector<8x96xf32>
    %216 = vector.extract_strided_slice %212 {offsets = [0, 0], sizes = [8, 32], strides = [1, 1]} : vector<8x96xf32> to vector<8x32xf32>
    %217 = vector.extract_strided_slice %215 {offsets = [0, 0], sizes = [8, 32], strides = [1, 1]} : vector<8x96xf32> to vector<8x32xf32>
    %218 = arith.addf %216, %217 : vector<8x32xf32>
    %219 = arith.negf %218 : vector<8x32xf32>
    %220 = math.exp %219 : vector<8x32xf32>
    %cst_53 = arith.constant 1.000000e+00 : f32
    %221 = vector.broadcast %cst_53 : f32 to vector<8x32xf32>
    %222 = arith.addf %221, %220 : vector<8x32xf32>
    %223 = arith.divf %221, %222 : vector<8x32xf32>
    %224 = vector.extract_strided_slice %212 {offsets = [0, 32], sizes = [8, 32], strides = [1, 1]} : vector<8x96xf32> to vector<8x32xf32>
    %225 = vector.extract_strided_slice %215 {offsets = [0, 32], sizes = [8, 32], strides = [1, 1]} : vector<8x96xf32> to vector<8x32xf32>
    %226 = arith.addf %224, %225 : vector<8x32xf32>
    %227 = arith.negf %226 : vector<8x32xf32>
    %228 = math.exp %227 : vector<8x32xf32>
    %cst_54 = arith.constant 1.000000e+00 : f32
    %229 = vector.broadcast %cst_54 : f32 to vector<8x32xf32>
    %230 = arith.addf %229, %228 : vector<8x32xf32>
    %231 = arith.divf %229, %230 : vector<8x32xf32>
    %232 = vector.extract_strided_slice %212 {offsets = [0, 64], sizes = [8, 32], strides = [1, 1]} : vector<8x96xf32> to vector<8x32xf32>
    %233 = vector.extract_strided_slice %215 {offsets = [0, 64], sizes = [8, 32], strides = [1, 1]} : vector<8x96xf32> to vector<8x32xf32>
    %234 = arith.mulf %223, %233 : vector<8x32xf32>
    %235 = arith.addf %232, %234 : vector<8x32xf32>
    %236 = math.tanh %235 : vector<8x32xf32>
    %cst_55 = arith.constant 1.000000e+00 : f32
    %237 = vector.broadcast %cst_55 : f32 to vector<8x32xf32>
    %238 = arith.subf %237, %231 : vector<8x32xf32>
    %239 = arith.mulf %238, %236 : vector<8x32xf32>
    %240 = arith.mulf %231, %208 : vector<8x32xf32>
    %241 = arith.addf %239, %240 : vector<8x32xf32>
    %c0_56 = arith.constant 0 : index
    %c48 = arith.constant 48 : index
    %c0_57 = arith.constant 0 : index
    %242 = vector.load %arg6[%c0_56, %c48, %c0_57] : memref<1x56x32xf32, #tpu.memory_space<vmem>>, vector<1x8x32xf32>
    %243 = vector.shape_cast %242 : vector<1x8x32xf32> to vector<8x32xf32>
    %244 = vector.shape_cast %241 : vector<8x32xf32> to vector<1x8x32xf32>
    tpu.vector_store %arg6[%c0_56, %c48, %c0_57], %244 {strides = array<i32>} : memref<1x56x32xf32, #tpu.memory_space<vmem>>, vector<1x8x32xf32>,
    return
  }
  func.func @transform_0(%arg0: i32) -> (i32, i32, i32) {
    %c0_i32 = arith.constant 0 : i32
    %c0_i32_0 = arith.constant 0 : i32
    %c0_i32_1 = arith.constant 0 : i32
    return %arg0, %c0_i32, %c0_i32_0 : i32, i32, i32
  }
  func.func @transform_1(%arg0: i32) -> (i32, i32, i32) {
    %c0_i32 = arith.constant 0 : i32
    %c0_i32_0 = arith.constant 0 : i32
    %c0_i32_1 = arith.constant 0 : i32
    return %arg0, %c0_i32, %c0_i32_0 : i32, i32, i32
  }
  func.func @transform_2(%arg0: i32) -> (i32, i32, i32) {
    %c0_i32 = arith.constant 0 : i32
    %c0_i32_0 = arith.constant 0 : i32
    %c0_i32_1 = arith.constant 0 : i32
    return %arg0, %c0_i32, %c0_i32_0 : i32, i32, i32
  }
  func.func @transform_3(%arg0: i32) -> (i32, i32, i32) {
    %c0_i32 = arith.constant 0 : i32
    %c0_i32_0 = arith.constant 0 : i32
    %c0_i32_1 = arith.constant 0 : i32
    return %arg0, %c0_i32, %c0_i32_0 : i32, i32, i32
  }
  func.func @transform_4(%arg0: i32) -> (i32, i32, i32) {
    %c0_i32 = arith.constant 0 : i32
    %c0_i32_0 = arith.constant 0 : i32
    %c0_i32_1 = arith.constant 0 : i32
    return %arg0, %c0_i32, %c0_i32_0 : i32, i32, i32
  }
  func.func @transform_5(%arg0: i32) -> (i32, i32, i32) {
    %c0_i32 = arith.constant 0 : i32
    %c0_i32_0 = arith.constant 0 : i32
    %c0_i32_1 = arith.constant 0 : i32
    return %arg0, %c0_i32, %c0_i32_0 : i32, i32, i32
  }
}

module attributes {stable_mosaic.version = 11 : i64} {
  func.func @_decoder_kernel(%arg0: i32, %arg1: memref<7xi32, #tpu.memory_space<smem>>, %arg2: memref<7x8x128xf32, #tpu.memory_space<vmem>>, %arg3: memref<8x32xf32, #tpu.memory_space<vmem>>, %arg4: memref<8x7x64xf32, #tpu.memory_space<vmem>>, %arg5: memref<8x7x32xf32, #tpu.memory_space<vmem>>, %arg6: memref<128x16xf32, #tpu.memory_space<vmem>>, %arg7: memref<32x32xf32, #tpu.memory_space<vmem>>, %arg8: memref<1x32xf32, #tpu.memory_space<vmem>>, %arg9: memref<16x96xf32, #tpu.memory_space<vmem>>, %arg10: memref<64x96xf32, #tpu.memory_space<vmem>>, %arg11: memref<1x96xf32, #tpu.memory_space<vmem>>, %arg12: memref<32x96xf32, #tpu.memory_space<vmem>>, %arg13: memref<1x96xf32, #tpu.memory_space<vmem>>, %arg14: memref<32x128xf32, #tpu.memory_space<vmem>>, %arg15: memref<64x128xf32, #tpu.memory_space<vmem>>, %arg16: memref<16x128xf32, #tpu.memory_space<vmem>>, %arg17: memref<1x128xf32, #tpu.memory_space<vmem>>, %arg18: memref<7x8x128xf32, #tpu.memory_space<vmem>>, %arg19: memref<8x32xf32, #tpu.memory_space<vmem>>, %arg20: memref<8x128xf32, #tpu.memory_space<vmem>>, %arg21: memref<8x128xf32, #tpu.memory_space<vmem>>) attributes {dimension_semantics = [#tpu.dimension_semantics<arbitrary>], iteration_bounds = array<i64: 7>, scalar_prefetch = 1 : i64, scratch_operands = 3 : i64, tpu.core_type = #tpu.core_type<tc>, window_params = [{pipeline_mode = #tpu.pipeline_mode<synchronous>, transform_indices = @transform_0, window_bounds = array<i64: 7, 8, 128>}, {pipeline_mode = #tpu.pipeline_mode<synchronous>, transform_indices = @transform_1, window_bounds = array<i64: 8, 32>}, {pipeline_mode = #tpu.pipeline_mode<synchronous>, transform_indices = @transform_2, window_bounds = array<i64: 8, 7, 64>}, {pipeline_mode = #tpu.pipeline_mode<synchronous>, transform_indices = @transform_3, window_bounds = array<i64: 8, 7, 32>}, {pipeline_mode = #tpu.pipeline_mode<synchronous>, transform_indices = @transform_4, window_bounds = array<i64: 128, 16>}, {pipeline_mode = #tpu.pipeline_mode<synchronous>, transform_indices = @transform_5, window_bounds = array<i64: 32, 32>}, {pipeline_mode = #tpu.pipeline_mode<synchronous>, transform_indices = @transform_6, window_bounds = array<i64: 1, 32>}, {pipeline_mode = #tpu.pipeline_mode<synchronous>, transform_indices = @transform_7, window_bounds = array<i64: 16, 96>}, {pipeline_mode = #tpu.pipeline_mode<synchronous>, transform_indices = @transform_8, window_bounds = array<i64: 64, 96>}, {pipeline_mode = #tpu.pipeline_mode<synchronous>, transform_indices = @transform_9, window_bounds = array<i64: 1, 96>}, {pipeline_mode = #tpu.pipeline_mode<synchronous>, transform_indices = @transform_10, window_bounds = array<i64: 32, 96>}, {pipeline_mode = #tpu.pipeline_mode<synchronous>, transform_indices = @transform_11, window_bounds = array<i64: 1, 96>}, {pipeline_mode = #tpu.pipeline_mode<synchronous>, transform_indices = @transform_12, window_bounds = array<i64: 32, 128>}, {pipeline_mode = #tpu.pipeline_mode<synchronous>, transform_indices = @transform_13, window_bounds = array<i64: 64, 128>}, {pipeline_mode = #tpu.pipeline_mode<synchronous>, transform_indices = @transform_14, window_bounds = array<i64: 16, 128>}, {pipeline_mode = #tpu.pipeline_mode<synchronous>, transform_indices = @transform_15, window_bounds = array<i64: 1, 128>}, {pipeline_mode = #tpu.pipeline_mode<synchronous>, transform_indices = @transform_16, window_bounds = array<i64: 7, 8, 128>}]} {
    %c0_i32 = arith.constant 0 : i32
    %0 = arith.cmpi eq, %arg0, %c0_i32 : i32
    %1 = arith.extui %0 : i1 to i32
    %c0_i32_0 = arith.constant 0 : i32
    %2 = arith.cmpi ne, %1, %c0_i32_0 : i32
    scf.if %2 {
      %c0_63 = arith.constant 0 : index
      %c0_64 = arith.constant 0 : index
      %117 = vector.load %arg3[%c0_63, %c0_64] : memref<8x32xf32, #tpu.memory_space<vmem>>, vector<8x32xf32>
      %c0_65 = arith.constant 0 : index
      %c0_66 = arith.constant 0 : index
      %118 = vector.load %arg19[%c0_65, %c0_66] : memref<8x32xf32, #tpu.memory_space<vmem>>, vector<8x32xf32>
      tpu.vector_store %arg19[%c0_65, %c0_66], %117 {strides = array<i32>} : memref<8x32xf32, #tpu.memory_space<vmem>>, vector<8x32xf32>,
      %cst_67 = arith.constant 0.000000e+00 : f32
      %119 = vector.broadcast %cst_67 : f32 to vector<8x128xf32>
      %c0_68 = arith.constant 0 : index
      %c0_69 = arith.constant 0 : index
      %120 = vector.load %arg20[%c0_68, %c0_69] : memref<8x128xf32, #tpu.memory_space<vmem>>, vector<8x128xf32>
      tpu.vector_store %arg20[%c0_68, %c0_69], %119 {strides = array<i32>} : memref<8x128xf32, #tpu.memory_space<vmem>>, vector<8x128xf32>,
      %121 = tpu.iota {dimensions = array<i32: 1>} : vector<8x128xi32>
      %122 = arith.sitofp %121 : vector<8x128xi32> to vector<8x128xf32>
      %c0_70 = arith.constant 0 : index
      %c0_71 = arith.constant 0 : index
      %123 = vector.load %arg21[%c0_70, %c0_71] : memref<8x128xf32, #tpu.memory_space<vmem>>, vector<8x128xf32>
      tpu.vector_store %arg21[%c0_70, %c0_71], %122 {strides = array<i32>} : memref<8x128xf32, #tpu.memory_space<vmem>>, vector<8x128xf32>,
    } else {
    }
    %3 = arith.index_cast %arg0 : i32 to index
    %4 = memref.load %arg1[%3] : memref<7xi32, #tpu.memory_space<smem>>
    %c0_i32_1 = arith.constant 0 : i32
    %5 = arith.cmpi sgt, %4, %c0_i32_1 : i32
    %6 = arith.extui %5 : i1 to i32
    %7 = arith.sitofp %6 : i32 to f32
    %8 = arith.index_cast %arg0 : i32 to index
    %c0 = arith.constant 0 : index
    %c0_2 = arith.constant 0 : index
    %9 = vector.load %arg2[%8, %c0, %c0_2] : memref<7x8x128xf32, #tpu.memory_space<vmem>>, vector<1x8x128xf32>
    %10 = vector.shape_cast %9 : vector<1x8x128xf32> to vector<8x128xf32>
    %11 = vector.broadcast %7 : f32 to vector<8x128xf32>
    %12 = arith.mulf %11, %10 : vector<8x128xf32>
    %cst = arith.constant 1.000000e+00 : f32
    %13 = arith.subf %cst, %7 : f32
    %c0_3 = arith.constant 0 : index
    %c0_4 = arith.constant 0 : index
    %14 = vector.load %arg20[%c0_3, %c0_4] : memref<8x128xf32, #tpu.memory_space<vmem>>, vector<8x128xf32>
    %15 = vector.broadcast %13 : f32 to vector<8x128xf32>
    %16 = arith.mulf %15, %14 : vector<8x128xf32>
    %17 = arith.addf %12, %16 : vector<8x128xf32>
    %c0_5 = arith.constant 0 : index
    %c0_6 = arith.constant 0 : index
    %18 = vector.load %arg6[%c0_5, %c0_6] : memref<128x16xf32, #tpu.memory_space<vmem>>, vector<128x16xf32>
    %cst_7 = arith.constant dense<0.000000e+00> : vector<8x16xf32>
    %19 = tpu.matmul %17, %18, %cst_7 {dimension_numbers = #tpu.dot_dimension_numbers<[1], [0], [0], [1], [0, 0, 1, 1], [], []>} : vector<8x128xf32>, vector<128x16xf32>, vector<8x16xf32> -> vector<8x16xf32>
    %c0_8 = arith.constant 0 : index
    %c0_9 = arith.constant 0 : index
    %20 = vector.load %arg19[%c0_8, %c0_9] : memref<8x32xf32, #tpu.memory_space<vmem>>, vector<8x32xf32>
    %c0_10 = arith.constant 0 : index
    %c0_11 = arith.constant 0 : index
    %21 = vector.load %arg7[%c0_10, %c0_11] : memref<32x32xf32, #tpu.memory_space<vmem>>, vector<32x32xf32>
    %cst_12 = arith.constant dense<0.000000e+00> : vector<8x32xf32>
    %22 = tpu.matmul %20, %21, %cst_12 {dimension_numbers = #tpu.dot_dimension_numbers<[1], [0], [0], [1], [0, 0, 1, 1], [], []>} : vector<8x32xf32>, vector<32x32xf32>, vector<8x32xf32> -> vector<8x32xf32>
    %23 = vector.shape_cast %22 : vector<8x32xf32> to vector<8x1x32xf32>
    %c0_13 = arith.constant 0 : index
    %c0_14 = arith.constant 0 : index
    %c0_15 = arith.constant 0 : index
    %24 = vector.load %arg5[%c0_13, %c0_14, %c0_15] : memref<8x7x32xf32, #tpu.memory_space<vmem>>, vector<8x7x32xf32>
    %25 = vector.broadcast %23 : vector<8x1x32xf32> to vector<8x7x32xf32>
    %26 = arith.addf %25, %24 : vector<8x7x32xf32>
    %27 = math.tanh %26 : vector<8x7x32xf32>
    %c0_16 = arith.constant 0 : index
    %c0_17 = arith.constant 0 : index
    %28 = vector.load %arg8[%c0_16, %c0_17] : memref<1x32xf32, #tpu.memory_space<vmem>>, vector<1x32xf32>
    %29 = vector.shape_cast %28 : vector<1x32xf32> to vector<1x1x32xf32>
    %30 = vector.broadcast %29 : vector<1x1x32xf32> to vector<8x7x32xf32>
    %31 = arith.mulf %27, %30 : vector<8x7x32xf32>
    %cst_18 = arith.constant dense<0.000000e+00> : vector<8x7xf32>
    %32 = vector.multi_reduction <add>, %31, %cst_18 [2] : vector<8x7x32xf32> to vector<8x7xf32>
    %cst_19 = arith.constant dense<0xFF800000> : vector<8xf32>
    %33 = vector.multi_reduction <maximumf>, %32, %cst_19 [1] : vector<8x7xf32> to vector<8xf32>
    %34 = vector.shape_cast %33 : vector<8xf32> to vector<8x1xf32>
    %35 = vector.broadcast %34 : vector<8x1xf32> to vector<8x7xf32>
    %36 = arith.subf %32, %35 : vector<8x7xf32>
    %37 = math.exp %36 : vector<8x7xf32>
    %cst_20 = arith.constant dense<0.000000e+00> : vector<8xf32>
    %38 = vector.multi_reduction <add>, %37, %cst_20 [1] : vector<8x7xf32> to vector<8xf32>
    %39 = vector.shape_cast %38 : vector<8xf32> to vector<8x1xf32>
    %40 = tpu.reciprocal %39 {approx = true} : vector<8x1xf32> -> vector<8x1xf32>
    %41 = vector.broadcast %40 : vector<8x1xf32> to vector<8x7xf32>
    %42 = arith.mulf %37, %41 : vector<8x7xf32>
    %43 = vector.shape_cast %42 : vector<8x7xf32> to vector<8x7x1xf32>
    %c0_21 = arith.constant 0 : index
    %c0_22 = arith.constant 0 : index
    %c0_23 = arith.constant 0 : index
    %44 = vector.load %arg4[%c0_21, %c0_22, %c0_23] : memref<8x7x64xf32, #tpu.memory_space<vmem>>, vector<8x7x64xf32>
    %45 = vector.broadcast %43 : vector<8x7x1xf32> to vector<8x7x64xf32>
    %46 = arith.mulf %45, %44 : vector<8x7x64xf32>
    %cst_24 = arith.constant dense<0.000000e+00> : vector<8x64xf32>
    %47 = vector.multi_reduction <add>, %46, %cst_24 [1] : vector<8x7x64xf32> to vector<8x64xf32>
    %c0_25 = arith.constant 0 : index
    %c0_26 = arith.constant 0 : index
    %48 = vector.load %arg9[%c0_25, %c0_26] : memref<16x96xf32, #tpu.memory_space<vmem>>, vector<16x96xf32>
    %cst_27 = arith.constant dense<0.000000e+00> : vector<8x96xf32>
    %49 = tpu.matmul %19, %48, %cst_27 {dimension_numbers = #tpu.dot_dimension_numbers<[1], [0], [0], [1], [0, 0, 1, 1], [], []>} : vector<8x16xf32>, vector<16x96xf32>, vector<8x96xf32> -> vector<8x96xf32>
    %c0_28 = arith.constant 0 : index
    %c0_29 = arith.constant 0 : index
    %50 = vector.load %arg10[%c0_28, %c0_29] : memref<64x96xf32, #tpu.memory_space<vmem>>, vector<64x96xf32>
    %cst_30 = arith.constant dense<0.000000e+00> : vector<8x96xf32>
    %51 = tpu.matmul %47, %50, %cst_30 {dimension_numbers = #tpu.dot_dimension_numbers<[1], [0], [0], [1], [0, 0, 1, 1], [], []>} : vector<8x64xf32>, vector<64x96xf32>, vector<8x96xf32> -> vector<8x96xf32>
    %52 = arith.addf %49, %51 : vector<8x96xf32>
    %c0_31 = arith.constant 0 : index
    %c0_32 = arith.constant 0 : index
    %53 = vector.load %arg11[%c0_31, %c0_32] : memref<1x96xf32, #tpu.memory_space<vmem>>, vector<1x96xf32>
    %54 = vector.broadcast %53 : vector<1x96xf32> to vector<8x96xf32>
    %55 = arith.addf %52, %54 : vector<8x96xf32>
    %c0_33 = arith.constant 0 : index
    %c0_34 = arith.constant 0 : index
    %56 = vector.load %arg12[%c0_33, %c0_34] : memref<32x96xf32, #tpu.memory_space<vmem>>, vector<32x96xf32>
    %cst_35 = arith.constant dense<0.000000e+00> : vector<8x96xf32>
    %57 = tpu.matmul %20, %56, %cst_35 {dimension_numbers = #tpu.dot_dimension_numbers<[1], [0], [0], [1], [0, 0, 1, 1], [], []>} : vector<8x32xf32>, vector<32x96xf32>, vector<8x96xf32> -> vector<8x96xf32>
    %c0_36 = arith.constant 0 : index
    %c0_37 = arith.constant 0 : index
    %58 = vector.load %arg13[%c0_36, %c0_37] : memref<1x96xf32, #tpu.memory_space<vmem>>, vector<1x96xf32>
    %59 = vector.broadcast %58 : vector<1x96xf32> to vector<8x96xf32>
    %60 = arith.addf %57, %59 : vector<8x96xf32>
    %61 = vector.extract_strided_slice %55 {offsets = [0, 0], sizes = [8, 32], strides = [1, 1]} : vector<8x96xf32> to vector<8x32xf32>
    %62 = vector.extract_strided_slice %60 {offsets = [0, 0], sizes = [8, 32], strides = [1, 1]} : vector<8x96xf32> to vector<8x32xf32>
    %63 = arith.addf %61, %62 : vector<8x32xf32>
    %64 = arith.negf %63 : vector<8x32xf32>
    %65 = math.exp %64 : vector<8x32xf32>
    %cst_38 = arith.constant 1.000000e+00 : f32
    %66 = vector.broadcast %cst_38 : f32 to vector<8x32xf32>
    %67 = arith.addf %66, %65 : vector<8x32xf32>
    %68 = arith.divf %66, %67 : vector<8x32xf32>
    %69 = vector.extract_strided_slice %55 {offsets = [0, 32], sizes = [8, 32], strides = [1, 1]} : vector<8x96xf32> to vector<8x32xf32>
    %70 = vector.extract_strided_slice %60 {offsets = [0, 32], sizes = [8, 32], strides = [1, 1]} : vector<8x96xf32> to vector<8x32xf32>
    %71 = arith.addf %69, %70 : vector<8x32xf32>
    %72 = arith.negf %71 : vector<8x32xf32>
    %73 = math.exp %72 : vector<8x32xf32>
    %cst_39 = arith.constant 1.000000e+00 : f32
    %74 = vector.broadcast %cst_39 : f32 to vector<8x32xf32>
    %75 = arith.addf %74, %73 : vector<8x32xf32>
    %76 = arith.divf %74, %75 : vector<8x32xf32>
    %77 = vector.extract_strided_slice %55 {offsets = [0, 64], sizes = [8, 32], strides = [1, 1]} : vector<8x96xf32> to vector<8x32xf32>
    %78 = vector.extract_strided_slice %60 {offsets = [0, 64], sizes = [8, 32], strides = [1, 1]} : vector<8x96xf32> to vector<8x32xf32>
    %79 = arith.mulf %68, %78 : vector<8x32xf32>
    %80 = arith.addf %77, %79 : vector<8x32xf32>
    %81 = math.tanh %80 : vector<8x32xf32>
    %cst_40 = arith.constant 1.000000e+00 : f32
    %82 = vector.broadcast %cst_40 : f32 to vector<8x32xf32>
    %83 = arith.subf %82, %76 : vector<8x32xf32>
    %84 = arith.mulf %83, %81 : vector<8x32xf32>
    %85 = arith.mulf %76, %20 : vector<8x32xf32>
    %86 = arith.addf %84, %85 : vector<8x32xf32>
    %c0_41 = arith.constant 0 : index
    %c0_42 = arith.constant 0 : index
    %87 = vector.load %arg14[%c0_41, %c0_42] : memref<32x128xf32, #tpu.memory_space<vmem>>, vector<32x128xf32>
    %cst_43 = arith.constant dense<0.000000e+00> : vector<8x128xf32>
    %88 = tpu.matmul %86, %87, %cst_43 {dimension_numbers = #tpu.dot_dimension_numbers<[1], [0], [0], [1], [0, 0, 1, 1], [], []>} : vector<8x32xf32>, vector<32x128xf32>, vector<8x128xf32> -> vector<8x128xf32>
    %c0_44 = arith.constant 0 : index
    %c0_45 = arith.constant 0 : index
    %89 = vector.load %arg15[%c0_44, %c0_45] : memref<64x128xf32, #tpu.memory_space<vmem>>, vector<64x128xf32>
    %cst_46 = arith.constant dense<0.000000e+00> : vector<8x128xf32>
    %90 = tpu.matmul %47, %89, %cst_46 {dimension_numbers = #tpu.dot_dimension_numbers<[1], [0], [0], [1], [0, 0, 1, 1], [], []>} : vector<8x64xf32>, vector<64x128xf32>, vector<8x128xf32> -> vector<8x128xf32>
    %91 = arith.addf %88, %90 : vector<8x128xf32>
    %c0_47 = arith.constant 0 : index
    %c0_48 = arith.constant 0 : index
    %92 = vector.load %arg16[%c0_47, %c0_48] : memref<16x128xf32, #tpu.memory_space<vmem>>, vector<16x128xf32>
    %cst_49 = arith.constant dense<0.000000e+00> : vector<8x128xf32>
    %93 = tpu.matmul %19, %92, %cst_49 {dimension_numbers = #tpu.dot_dimension_numbers<[1], [0], [0], [1], [0, 0, 1, 1], [], []>} : vector<8x16xf32>, vector<16x128xf32>, vector<8x128xf32> -> vector<8x128xf32>
    %94 = arith.addf %91, %93 : vector<8x128xf32>
    %c0_50 = arith.constant 0 : index
    %c0_51 = arith.constant 0 : index
    %95 = vector.load %arg17[%c0_50, %c0_51] : memref<1x128xf32, #tpu.memory_space<vmem>>, vector<1x128xf32>
    %96 = vector.broadcast %95 : vector<1x128xf32> to vector<8x128xf32>
    %97 = arith.addf %94, %96 : vector<8x128xf32>
    %98 = arith.index_cast %arg0 : i32 to index
    %c0_52 = arith.constant 0 : index
    %c0_53 = arith.constant 0 : index
    %99 = vector.load %arg18[%98, %c0_52, %c0_53] : memref<7x8x128xf32, #tpu.memory_space<vmem>>, vector<1x8x128xf32>
    %100 = vector.shape_cast %99 : vector<1x8x128xf32> to vector<8x128xf32>
    %101 = vector.shape_cast %97 : vector<8x128xf32> to vector<1x8x128xf32>
    tpu.vector_store %arg18[%98, %c0_52, %c0_53], %101 {strides = array<i32>} : memref<7x8x128xf32, #tpu.memory_space<vmem>>, vector<1x8x128xf32>,
    %c0_54 = arith.constant 0 : index
    %c0_55 = arith.constant 0 : index
    %102 = vector.load %arg21[%c0_54, %c0_55] : memref<8x128xf32, #tpu.memory_space<vmem>>, vector<8x128xf32>
    %cst_56 = arith.constant dense<0xFF800000> : vector<8xf32>
    %103 = vector.multi_reduction <maximumf>, %97, %cst_56 [1] : vector<8x128xf32> to vector<8xf32>
    %104 = vector.shape_cast %103 : vector<8xf32> to vector<8x1xf32>
    %105 = vector.broadcast %104 : vector<8x1xf32> to vector<8x128xf32>
    %106 = arith.cmpf oeq, %97, %105 : vector<8x128xf32>
    %cst_57 = arith.constant 1.280000e+02 : f32
    %107 = vector.broadcast %cst_57 : f32 to vector<8x128xf32>
    %108 = arith.select %106, %102, %107 : vector<8x128xi1>, vector<8x128xf32>
    %cst_58 = arith.constant dense<0x7F800000> : vector<8xf32>
    %109 = vector.multi_reduction <minimumf>, %108, %cst_58 [1] : vector<8x128xf32> to vector<8xf32>
    %110 = vector.shape_cast %109 : vector<8xf32> to vector<8x1xf32>
    %111 = vector.broadcast %110 : vector<8x1xf32> to vector<8x128xf32>
    %112 = arith.cmpf oeq, %102, %111 : vector<8x128xf32>
    %113 = arith.extui %112 : vector<8x128xi1> to vector<8x128xi32>
    %114 = arith.sitofp %113 : vector<8x128xi32> to vector<8x128xf32>
    %c0_59 = arith.constant 0 : index
    %c0_60 = arith.constant 0 : index
    %115 = vector.load %arg20[%c0_59, %c0_60] : memref<8x128xf32, #tpu.memory_space<vmem>>, vector<8x128xf32>
    tpu.vector_store %arg20[%c0_59, %c0_60], %114 {strides = array<i32>} : memref<8x128xf32, #tpu.memory_space<vmem>>, vector<8x128xf32>,
    %c0_61 = arith.constant 0 : index
    %c0_62 = arith.constant 0 : index
    %116 = vector.load %arg19[%c0_61, %c0_62] : memref<8x32xf32, #tpu.memory_space<vmem>>, vector<8x32xf32>
    tpu.vector_store %arg19[%c0_61, %c0_62], %86 {strides = array<i32>} : memref<8x32xf32, #tpu.memory_space<vmem>>, vector<8x32xf32>,
    return
  }
  func.func @transform_0(%arg0: i32, %arg1: memref<7xi32, #tpu.memory_space<smem>>) -> (i32, i32, i32) {
    %c0_i32 = arith.constant 0 : i32
    %c0_i32_0 = arith.constant 0 : i32
    %c0_i32_1 = arith.constant 0 : i32
    %c0_i32_2 = arith.constant 0 : i32
    return %c0_i32, %c0_i32_0, %c0_i32_1 : i32, i32, i32
  }
  func.func @transform_1(%arg0: i32, %arg1: memref<7xi32, #tpu.memory_space<smem>>) -> (i32, i32) {
    %c0_i32 = arith.constant 0 : i32
    %c0_i32_0 = arith.constant 0 : i32
    %c0_i32_1 = arith.constant 0 : i32
    return %c0_i32, %c0_i32_0 : i32, i32
  }
  func.func @transform_2(%arg0: i32, %arg1: memref<7xi32, #tpu.memory_space<smem>>) -> (i32, i32, i32) {
    %c0_i32 = arith.constant 0 : i32
    %c0_i32_0 = arith.constant 0 : i32
    %c0_i32_1 = arith.constant 0 : i32
    %c0_i32_2 = arith.constant 0 : i32
    return %c0_i32, %c0_i32_0, %c0_i32_1 : i32, i32, i32
  }
  func.func @transform_3(%arg0: i32, %arg1: memref<7xi32, #tpu.memory_space<smem>>) -> (i32, i32, i32) {
    %c0_i32 = arith.constant 0 : i32
    %c0_i32_0 = arith.constant 0 : i32
    %c0_i32_1 = arith.constant 0 : i32
    %c0_i32_2 = arith.constant 0 : i32
    return %c0_i32, %c0_i32_0, %c0_i32_1 : i32, i32, i32
  }
  func.func @transform_4(%arg0: i32, %arg1: memref<7xi32, #tpu.memory_space<smem>>) -> (i32, i32) {
    %c0_i32 = arith.constant 0 : i32
    %c0_i32_0 = arith.constant 0 : i32
    %c0_i32_1 = arith.constant 0 : i32
    return %c0_i32, %c0_i32_0 : i32, i32
  }
  func.func @transform_5(%arg0: i32, %arg1: memref<7xi32, #tpu.memory_space<smem>>) -> (i32, i32) {
    %c0_i32 = arith.constant 0 : i32
    %c0_i32_0 = arith.constant 0 : i32
    %c0_i32_1 = arith.constant 0 : i32
    return %c0_i32, %c0_i32_0 : i32, i32
  }
  func.func @transform_6(%arg0: i32, %arg1: memref<7xi32, #tpu.memory_space<smem>>) -> (i32, i32) {
    %c0_i32 = arith.constant 0 : i32
    %c0_i32_0 = arith.constant 0 : i32
    %c0_i32_1 = arith.constant 0 : i32
    return %c0_i32, %c0_i32_0 : i32, i32
  }
  func.func @transform_7(%arg0: i32, %arg1: memref<7xi32, #tpu.memory_space<smem>>) -> (i32, i32) {
    %c0_i32 = arith.constant 0 : i32
    %c0_i32_0 = arith.constant 0 : i32
    %c0_i32_1 = arith.constant 0 : i32
    return %c0_i32, %c0_i32_0 : i32, i32
  }
  func.func @transform_8(%arg0: i32, %arg1: memref<7xi32, #tpu.memory_space<smem>>) -> (i32, i32) {
    %c0_i32 = arith.constant 0 : i32
    %c0_i32_0 = arith.constant 0 : i32
    %c0_i32_1 = arith.constant 0 : i32
    return %c0_i32, %c0_i32_0 : i32, i32
  }
  func.func @transform_9(%arg0: i32, %arg1: memref<7xi32, #tpu.memory_space<smem>>) -> (i32, i32) {
    %c0_i32 = arith.constant 0 : i32
    %c0_i32_0 = arith.constant 0 : i32
    %c0_i32_1 = arith.constant 0 : i32
    return %c0_i32, %c0_i32_0 : i32, i32
  }
  func.func @transform_10(%arg0: i32, %arg1: memref<7xi32, #tpu.memory_space<smem>>) -> (i32, i32) {
    %c0_i32 = arith.constant 0 : i32
    %c0_i32_0 = arith.constant 0 : i32
    %c0_i32_1 = arith.constant 0 : i32
    return %c0_i32, %c0_i32_0 : i32, i32
  }
  func.func @transform_11(%arg0: i32, %arg1: memref<7xi32, #tpu.memory_space<smem>>) -> (i32, i32) {
    %c0_i32 = arith.constant 0 : i32
    %c0_i32_0 = arith.constant 0 : i32
    %c0_i32_1 = arith.constant 0 : i32
    return %c0_i32, %c0_i32_0 : i32, i32
  }
  func.func @transform_12(%arg0: i32, %arg1: memref<7xi32, #tpu.memory_space<smem>>) -> (i32, i32) {
    %c0_i32 = arith.constant 0 : i32
    %c0_i32_0 = arith.constant 0 : i32
    %c0_i32_1 = arith.constant 0 : i32
    return %c0_i32, %c0_i32_0 : i32, i32
  }
  func.func @transform_13(%arg0: i32, %arg1: memref<7xi32, #tpu.memory_space<smem>>) -> (i32, i32) {
    %c0_i32 = arith.constant 0 : i32
    %c0_i32_0 = arith.constant 0 : i32
    %c0_i32_1 = arith.constant 0 : i32
    return %c0_i32, %c0_i32_0 : i32, i32
  }
  func.func @transform_14(%arg0: i32, %arg1: memref<7xi32, #tpu.memory_space<smem>>) -> (i32, i32) {
    %c0_i32 = arith.constant 0 : i32
    %c0_i32_0 = arith.constant 0 : i32
    %c0_i32_1 = arith.constant 0 : i32
    return %c0_i32, %c0_i32_0 : i32, i32
  }
  func.func @transform_15(%arg0: i32, %arg1: memref<7xi32, #tpu.memory_space<smem>>) -> (i32, i32) {
    %c0_i32 = arith.constant 0 : i32
    %c0_i32_0 = arith.constant 0 : i32
    %c0_i32_1 = arith.constant 0 : i32
    return %c0_i32, %c0_i32_0 : i32, i32
  }
  func.func @transform_16(%arg0: i32, %arg1: memref<7xi32, #tpu.memory_space<smem>>) -> (i32, i32, i32) {
    %c0_i32 = arith.constant 0 : i32
    %c0_i32_0 = arith.constant 0 : i32
    %c0_i32_1 = arith.constant 0 : i32
    %c0_i32_2 = arith.constant 0 : i32
    return %c0_i32, %c0_i32_0, %c0_i32_1 : i32, i32, i32
  }
}

</mosaic_0001>

<bundles_post_ra>
// kernel: seq2seq_forward.2
= control target key start
LH: loop header
LB: loop body
LE: loop exit
PB: predicated region body
PF: predicated region fallthrough
CT: control target
= control target key end

     0   :  { %s1542_s18 = smov 0   ;;  %s1767_s0 = inlined_call_operand.vmem [shape: f32[2,56,16], index: 0, kind: input, shape index: {}]   ;;  %s1768_s1 = inlined_call_operand.vmem [shape: f32[2,16,96], index: 1, kind: input, shape index: {}]   ;;  %s1769_s2 = inlined_call_operand.vmem [shape: f32[2,32,96], index: 2, kind: input, shape index: {}]   ;;  %s1770_s3 = inlined_call_operand.vmem [shape: f32[2,1,96], index: 3, kind: input, shape index: {}]   ;;  %s1771_s4 = inlined_call_operand.vmem [shape: f32[2,1,96], index: 4, kind: input, shape index: {}]   ;;  %s1772_s5 = inlined_call_operand.vmem [shape: f32[2,56,32], index: 5, kind: output, shape index: {}]  }
   0x1 LB: > { %s1262_s19 = sadd.s32 4294967295, %s1506_s18   ;;  %p1266_p0 = scmp.ge.s32.totalorder %s1506_s18, 1  ;;  %s1506_s18 = sphi %s1542_s18, %s15_s18  }
   0x2   : > { %p223_p1 = scmp.lt.s32.totalorder %s1506_s18, 3 }
   0x4   : > { %p224_p2 = pnand %p1266_p0, %p223_p1 }
   0x5   : > { %p267_p3 = scmp.lt.s32.totalorder (!%p224_p2), %s1262_s19, 1  ;;  %s1510_s10 = smov (!%p224_p2), 64  }
   0x6   : > { %227 = sbr.rel (%p224_p2) target bundleno = 4762 (0x129a), region = 40  ;;  %s1511_s14 = smov (!%p224_p2), 96  }
   0xb   : > { %v1508_v0 = vmov 0.0   ;;  %s1774_s19 = smov (!%p267_p3, %s1262_s19), 1  ;;  %vm1509_vm0 = vmmov 0   ;;  %vm314_vm1 = vcmask 130048   ;;  %vm442_vm2 = vcmask 261120  }
   0xc   : > { %1368 = vmatprep.subr.mxu1 %v1508_v0  ;;  %1343 = vmatprep.subr.mxu0 %v1508_v0  ;;  %s1298_s20 = sshll.u32 %s1774_s19, 5  ;;  %s1297_s21 = sshll.u32 %s1774_s19, 4 }
   0xd   : > { %1347 = vmatprep.mubr.msk.f32.mxu0 %vm1509_vm0, %v1508_v0  ;;  %1376 = vmatprep.mubr.msk.f32.mxu1 %vm1509_vm0, %v1508_v0  ;;  %s281_s24 = scalar_lea.vmem %s1769_s2, %s1298_s20  ;;  %s276_s27 = scalar_lea.vmem %s1768_s1, %s1297_s21 }
   0xe   : > { %v1566_v1 = vld [vmem:[%s281_s24 + $0x18] sm:$0xff]  ;;  %v1568_v2 = vld [vmem:[%s281_s24 + $0x10] sm:$0xff]  ;;  %v294_v3 = vld [vmem:[%s276_s27 + $0x8] sm:$0xff]  ;;  %s1445_s28 = smul.u32 56, %s1774_s19  ;;  %s287_s9 = scalar_lea.vmem %s1771_s4, %s1774_s19 }
   0xf   : > { %1369 = vmatpush3.msra.mxu1 %v1566_v1  ;;  %1344 = vmatpush3.msra.mxu0 %v294_v3  ;;  %v293_v4 = vld [vmem:[%s276_s27] sm:$0xff]  ;;  %v1573_v5 = vld [vmem:[%s281_s24 + $0x8] sm:$0xff]  ;;  %s284_s13 = scalar_lea.vmem %s1770_s3, %s1774_s19 }
  0x10   : > { %1370 = vmatprep.subr.mxu1 %v1508_v0  ;;  %1345 = vmatprep.subr.mxu0 %v1508_v0  ;;  %s1581_s6 = scalar_lea.vmem %s1767_s0, %s1445_s28  ;;  %v1586_v7 = vld [vmem:[%s281_s24] sm:$0xff]  ;;  %s1642_s17 = scalar_lea.vmem %s1772_s5, %s1445_s28 }
  0x11   : > { %1371 = vmatpush3.msra.mxu1 %v1568_v2  ;;  %1346 = vmatpush3.msra.mxu0 %v293_v4  ;;  %v301_v6 = vld [vmem:[%s1581_s6] sm:$0xff]  ;;  %v302_v26 = vld [vmem:[%s1581_s6 + $0x8] sm:$0xff]  ;;  %v303_v49 = vld [vmem:[%s1581_s6 + $0x10] sm:$0xff] }
  0x12   : > { %1372 = vmatprep.subr.mxu1 %v1508_v0  ;;  %1348 = vmatmul.mubr.msk.f32.vlgmr.msra.gmra.mxu0 %vm314_vm1, %v301_v6  ;;  %v1619_v9 = vld [vmem:[%s287_s9] ss:$0 sm:$0xff] }
  0x13   : > { %1373 = vmatpush3.msra.mxu1 %v1573_v5  ;;  %1350 = vmatprep.mubr.msk.f32.mxu0 %vm1509_vm0, %v1508_v0  ;;  %v1627_v14 = vld [vmem:[%s284_s13] ss:$0 sm:$0xff] }
  0x14   : > { %1374 = vmatprep.subr.mxu1 %v1508_v0  ;;  %1401 = vmatprep.subr.mxu0 %v1508_v0 }
  0x15   : > { %1375 = vmatpush3.msra.mxu1 %v1586_v7  ;;  %1402 = vmatpush3.msra.mxu0 %v1566_v1 }
  0x16   : > { %1377 = vmatmul.mubr.f32.vlgmr.msra.gmra.mxu1 %v1508_v0  ;;  %1379 = vmatprep.subr.mxu1 %v1508_v0 }
  0x17   : > { %1380 = vmatpush3.msra.mxu1 %v1566_v1  ;;  %1387 = vmatprep.mubr.msk.f32.mxu1 %vm1509_vm0, %v1508_v0 }
  0x18   : > { %1381 = vmatprep.subr.mxu1 %v1508_v0  ;;  %1403 = vmatprep.subr.mxu0 %v1508_v0 }
  0x19   : > { %1382 = vmatpush3.msra.mxu1 %v1568_v2  ;;  %1404 = vmatpush3.msra.mxu0 %v1568_v2 }
  0x1a   : > { %1383 = vmatprep.subr.mxu1 %v1508_v0  ;;  %1405 = vmatprep.subr.mxu0 %v1508_v0 }
  0x1b   : > { %1384 = vmatpush3.msra.mxu1 %v1573_v5  ;;  %1406 = vmatpush3.msra.mxu0 %v1573_v5 }
  0x1c   : > { %1385 = vmatprep.subr.mxu1 %v1508_v0  ;;  %1407 = vmatprep.subr.mxu0 %v1508_v0 }
  0x1d   : > { %1386 = vmatpush3.msra.mxu1 %v1586_v7  ;;  %1408 = vmatpush3.msra.mxu0 %v1586_v7 }
  0x1e   : > { %1390 = vmatprep.subr.mxu1 %v1508_v0  ;;  %1423 = vmatprep.subr.mxu0 %v1508_v0 }
  0x1f   : > { %1351 = vmatmul.mubr.msk.f32.gmra.mxu0 %vm314_vm1, %v302_v26 }
  0x20   : > { %1353 = vmatprep.mubr.msk.f32.mxu0 %vm1509_vm0, %v1508_v0 }
  0x23   : > { %1354 = vmatmul.mubr.msk.f32.gmra.mxu0 %vm314_vm1, %v303_v49 }
  0x24   : > { %1356 = vmatprep.mubr.msk.f32.mxu0 %vm1509_vm0, %v1508_v0 }
  0xd2   : > { %v402_v8 = vpop.f32.mrf.mxu0 }
  0xd3   : > { %v403_v15 = vadd.f32 %v1627_v14, %v402_v8 }
  0xd4   : > { %v1349_v10 = vpop.f32.mrf.mxu0 }
  0xd6   : > { %v512_v11 = vpop.f32.mrf.mxu1 }
  0xd7   : > { %v513_v12 = vadd.f32 %v1619_v9, %v512_v11 }
  0xd8   : > { %v1378_v13 = vpop.f32.mrf.mxu1 }
  0xd9   : > { %524 = vrot.lane.b32.xlu0 %v513_v12, %s1510_s10  ;;  %v516_v16 = vadd.f32 %v513_v12, %v403_v15  ;;  %v304_v13 = vld [vmem:[%s1581_s6 + $0x18] sm:$0xff] }
  0xda   : > { %1357 = vmatmul.mubr.msk.f32.gmra.mxu0 %vm314_vm1, %v304_v13 }
  0xdb   : > { %v1282_v17 = vmul.f32 -1.442695, %v516_v16  ;;  %1359 = vmatprep.mubr.msk.f32.mxu0 %vm1509_vm0, %v1508_v0  ;;  %v306_v16 = vld [vmem:[%s1581_s6 + $0x28] sm:$0xff] }
  0xdd   : > { %1458 = vpow2.f32 %v1282_v17 }
  0xdf   : > { %v407_v33 = vpop.f32.mrf.mxu0 }
  0xe0   : > { %v408_v38 = vadd.f32 %v1627_v14, %v407_v33 }
  0xe1   : > { %v1352_v34 = vpop.f32.mrf.mxu0 }
  0xe3   : > { %v412_v56 = vpop.f32.mrf.mxu0 }
  0xe4   : > { %v413_v61 = vadd.f32 %v1627_v14, %v412_v56 }
  0xe5   : > { %v1355_v57 = vpop.f32.mrf.mxu0 }
  0xea   : > { %v1459_v18 = vpop.eup %1458 }
  0xeb   : > { %v520_v19 = vadd.f32 1.0, %v1459_v18  ;;  %v307_v18 = vld [vmem:[%s1581_s6 + $0x30] sm:$0xff] }
  0xed   : > { %1460 = vrcp.f32 %v520_v19 }
  0xfa   : > { %v1461_v20 = vpop.eup %1460 }
  0xfb   : > { %v534_v27 = vsub.f32 1.0, %v1461_v20  ;;  %v540_v29 = vmul.f32 0.0, %v1461_v20 }
 0x14b   : > { %v525_v21 = vpop.permute.xlu0 %524 }
 0x14c   : > { %v527_v22 = vmul.f32 %v1461_v20, %v525_v21 }
 0x14e   : > { %529 = vrot.lane.b32.xlu0 %v527_v22, %s1510_s10 }
 0x1c0   : > { %v530_v23 = vpop.permute.xlu0 %529 }
 0x1c1   : > { %v532_v24 = vadd.f32 %v530_v23, %v403_v15  ;;  %v305_v15 = vld [vmem:[%s1581_s6 + $0x20] sm:$0xff] }
 0x1c2   : > { %1360 = vmatmul.mubr.msk.f32.gmra.mxu0 %vm314_vm1, %v305_v15 }
 0x1c3   : > { %1462 = vtanh.f32 %v532_v24  ;;  %1362 = vmatprep.mubr.msk.f32.mxu0 %vm1509_vm0, %v1508_v0  ;;  %v417_v24 = vpop.f32.mrf.mxu0 }
 0x1c6   : > { %1363 = vmatmul.mubr.msk.f32.gmra.mxu0 %vm314_vm1, %v306_v16 }
 0x1c7   : > { %1365 = vmatprep.mubr.msk.f32.mxu0 %vm1509_vm0, %v1508_v0 }
 0x1ca   : > { %1366 = vmatmul.mubr.msk.f32.gmra.mxu0 %vm314_vm1, %v307_v18 }
 0x1cb   : > { %1409 = vmatprep.mubr.msk.f32.mxu0 %vm1509_vm0, %v1508_v0 }
 0x1d0   : > { %v1463_v25 = vpop.eup %1462 }
 0x1d1   : > { %536 = vrot.lane.b32.xlu1 %v1463_v25, %s1511_s14  ;;  %v1358_v25 = vpop.f32.mrf.mxu0 }
 0x243   : > { %v537_v28 = vpop.permute.xlu1 %536 }
 0x244   : > { %v539_v30 = vmul.f32 %v537_v28, %v534_v27 }
 0x246   : > { %v541_v31 = vadd.f32 %v540_v29, %v539_v30 }
 0x248   : > { %543 = vrot.lane.b32.xlu1 %v541_v31, %s1511_s14 }
 0x282   : > { %v422_v26 = vpop.f32.mrf.mxu0 }
 0x284   : > { %v1361_v27 = vpop.f32.mrf.mxu0 }
 0x286   : > { %v1702_v28 = vpop.f32.mrf.mxu0 }
 0x287   : > { %v428_v13 = vadd.f32 %v1627_v14, %v1702_v28 }
 0x288   : > { %v1364_v29 = vpop.f32.mrf.mxu0 }
 0x28a   : > { %v1704_v30 = vpop.f32.mrf.mxu0 }
 0x2ba   : > { %v544_v32 = vpop.permute.xlu1 %543 }
 0x2bb   : > { %546 = vst.msk [vmem:[%s1642_s17] sm:$0xff] %vm442_vm2, %v544_v32  ;;  %1388 = vmatmul.mubr.msk.f32.vlgmr.msra.gmra.mxu1 %vm442_vm2, %v544_v32 }
 0x2bc   : > { %1391 = vmatpush3.msra.mxu1 %v1566_v1  ;;  %1398 = vmatprep.mubr.msk.f32.mxu1 %vm1509_vm0, %v1508_v0 }
 0x2bd   : > { %1392 = vmatprep.subr.mxu1 %v1508_v0 }
 0x2be   : > { %1393 = vmatpush3.msra.mxu1 %v1568_v2 }
 0x2bf   : > { %1394 = vmatprep.subr.mxu1 %v1508_v0 }
 0x2c0   : > { %1395 = vmatpush3.msra.mxu1 %v1573_v5 }
 0x2c1   : > { %1396 = vmatprep.subr.mxu1 %v1508_v0 }
 0x2c2   : > { %1397 = vmatpush3.msra.mxu1 %v1586_v7 }
 0x2c3   : > { %1412 = vmatprep.subr.mxu1 %v1508_v0 }
 0x37b   : > { %v615_v35 = vpop.f32.mrf.mxu1 }
 0x37c   : > { %v616_v36 = vadd.f32 %v1619_v9, %v615_v35 }
 0x37d   : > { %v1389_v37 = vpop.f32.mrf.mxu1 }
 0x37e   : > { %627 = vrot.lane.b32.xlu0 %v616_v36, %s1510_s10  ;;  %v619_v39 = vadd.f32 %v616_v36, %v408_v38  ;;  %v418_v36 = vadd.f32 %v1627_v14, %v417_v24 }
 0x380   : > { %v1284_v40 = vmul.f32 -1.442695, %v619_v39 }
 0x382   : > { %1464 = vpow2.f32 %v1284_v40 }
 0x38f   : > { %v1465_v41 = vpop.eup %1464 }
 0x390   : > { %v623_v42 = vadd.f32 1.0, %v1465_v41 }
 0x392   : > { %1466 = vrcp.f32 %v623_v42 }
 0x39f   : > { %v1467_v43 = vpop.eup %1466 }
 0x3a0   : > { %v637_v50 = vsub.f32 1.0, %v1467_v43  ;;  %v643_v52 = vmul.f32 %v1467_v43, %v541_v31  ;;  %v1367_v31 = vpop.f32.mrf.mxu0 }
 0x3f0   : > { %v628_v44 = vpop.permute.xlu0 %627 }
 0x3f1   : > { %v630_v45 = vmul.f32 %v1467_v43, %v628_v44 }
 0x3f3   : > { %632 = vrot.lane.b32.xlu1 %v630_v45, %s1510_s10 }
 0x465   : > { %v633_v46 = vpop.permute.xlu1 %632 }
 0x466   : > { %v635_v47 = vadd.f32 %v633_v46, %v408_v38 }
 0x468   : > { %1468 = vtanh.f32 %v635_v47 }
 0x475   : > { %v1469_v48 = vpop.eup %1468 }
 0x476   : > { %639 = vrot.lane.b32.xlu0 %v1469_v48, %s1511_s14 }
 0x4e8   : > { %v640_v51 = vpop.permute.xlu0 %639 }
 0x4e9   : > { %v642_v53 = vmul.f32 %v640_v51, %v637_v50 }
 0x4eb   : > { %v644_v54 = vadd.f32 %v643_v52, %v642_v53 }
 0x4ed   : > { %646 = vrot.lane.b32.xlu1 %v644_v54, %s1511_s14 }
 0x55f   : > { %v647_v55 = vpop.permute.xlu1 %646 }
 0x560   : > { %649 = vst.msk [vmem:[%s1642_s17 + $0x8] sm:$0xff] %vm442_vm2, %v647_v55  ;;  %1399 = vmatmul.mubr.msk.f32.vlgmr.msra.gmra.mxu1 %vm442_vm2, %v647_v55 }
 0x561   : > { %1413 = vmatpush3.msra.mxu1 %v1566_v1  ;;  %1420 = vmatprep.mubr.msk.f32.mxu1 %vm1509_vm0, %v1508_v0 }
 0x562   : > { %1414 = vmatprep.subr.mxu1 %v1508_v0 }
 0x563   : > { %1415 = vmatpush3.msra.mxu1 %v1568_v2 }
 0x564   : > { %1416 = vmatprep.subr.mxu1 %v1508_v0 }
 0x565   : > { %1417 = vmatpush3.msra.mxu1 %v1573_v5 }
 0x566   : > { %1418 = vmatprep.subr.mxu1 %v1508_v0 }
 0x567   : > { %1419 = vmatpush3.msra.mxu1 %v1586_v7 }
 0x568   : > { %1434 = vmatprep.subr.mxu1 %v1508_v0 }
 0x620   : > { %v718_v58 = vpop.f32.mrf.mxu1 }
 0x621   : > { %v719_v59 = vadd.f32 %v1619_v9, %v718_v58 }
 0x622   : > { %v1400_v60 = vpop.f32.mrf.mxu1 }
 0x623   : > { %730 = vrot.lane.b32.xlu0 %v719_v59, %s1510_s10  ;;  %v722_v62 = vadd.f32 %v719_v59, %v413_v61 }
 0x625   : > { %v1286_v63 = vmul.f32 -1.442695, %v722_v62 }
 0x627   : > { %1470 = vpow2.f32 %v1286_v63 }
 0x634   : > { %v1471_v3 = vpop.eup %1470 }
 0x635   : > { %v726_v4 = vadd.f32 1.0, %v1471_v3 }
 0x637   : > { %1472 = vrcp.f32 %v726_v4 }
 0x644   : > { %v1473_v6 = vpop.eup %1472 }
 0x645   : > { %v740_v19 = vsub.f32 1.0, %v1473_v6  ;;  %v746_v21 = vmul.f32 %v1473_v6, %v644_v54 }
 0x695   : > { %v731_v8 = vpop.permute.xlu0 %730 }
 0x696   : > { %v733_v10 = vmul.f32 %v1473_v6, %v731_v8 }
 0x698   : > { %735 = vrot.lane.b32.xlu1 %v733_v10, %s1510_s10 }
 0x70a   : > { %v736_v11 = vpop.permute.xlu1 %735 }
 0x70b   : > { %v738_v12 = vadd.f32 %v736_v11, %v413_v61 }
 0x70d   : > { %1474 = vtanh.f32 %v738_v12 }
 0x71a   : > { %v1475_v17 = vpop.eup %1474 }
 0x71b   : > { %742 = vrot.lane.b32.xlu0 %v1475_v17, %s1511_s14 }
 0x78d   : > { %v743_v20 = vpop.permute.xlu0 %742 }
 0x78e   : > { %v745_v22 = vmul.f32 %v743_v20, %v740_v19 }
 0x790   : > { %v747_v23 = vadd.f32 %v746_v21, %v745_v22 }
 0x792   : > { %749 = vrot.lane.b32.xlu1 %v747_v23, %s1511_s14 }
 0x804   : > { %v750_v32 = vpop.permute.xlu1 %749 }
 0x805   : > { %752 = vst.msk [vmem:[%s1642_s17 + $0x10] sm:$0xff] %vm442_vm2, %v750_v32  ;;  %1410 = vmatmul.mubr.msk.f32.vlgmr.msra.gmra.mxu0 %vm442_vm2, %v750_v32 }
 0x806   : > { %1424 = vmatpush3.msra.mxu0 %v1566_v1  ;;  %1431 = vmatprep.mubr.msk.f32.mxu0 %vm1509_vm0, %v1508_v0 }
 0x807   : > { %1425 = vmatprep.subr.mxu0 %v1508_v0 }
 0x808   : > { %1426 = vmatpush3.msra.mxu0 %v1568_v2 }
 0x809   : > { %1427 = vmatprep.subr.mxu0 %v1508_v0 }
 0x80a   : > { %1428 = vmatpush3.msra.mxu0 %v1573_v5 }
 0x80b   : > { %1429 = vmatprep.subr.mxu0 %v1508_v0 }
 0x80c   : > { %1430 = vmatpush3.msra.mxu0 %v1586_v7 }
 0x8c5   : > { %v821_v33 = vpop.f32.mrf.mxu0 }
 0x8c6   : > { %v822_v34 = vadd.f32 %v1619_v9, %v821_v33 }
 0x8c7   : > { %v1411_v35 = vpop.f32.mrf.mxu0 }
 0x8c8   : > { %833 = vrot.lane.b32.xlu0 %v822_v34, %s1510_s10  ;;  %v825_v37 = vadd.f32 %v822_v34, %v418_v36  ;;  %v433_v35 = vadd.f32 %v1627_v14, %v1704_v30 }
 0x8ca   : > { %v1288_v38 = vmul.f32 -1.442695, %v825_v37 }
 0x8cc   : > { %1476 = vpow2.f32 %v1288_v38 }
 0x8d9   : > { %v1477_v39 = vpop.eup %1476 }
 0x8da   : > { %v829_v40 = vadd.f32 1.0, %v1477_v39 }
 0x8dc   : > { %1478 = vrcp.f32 %v829_v40 }
 0x8e9   : > { %v1479_v41 = vpop.eup %1478 }
 0x8ea   : > { %v843_v47 = vsub.f32 1.0, %v1479_v41  ;;  %v849_v49 = vmul.f32 %v1479_v41, %v747_v23 }
 0x93a   : > { %v834_v42 = vpop.permute.xlu0 %833 }
 0x93b   : > { %v836_v43 = vmul.f32 %v1479_v41, %v834_v42 }
 0x93d   : > { %838 = vrot.lane.b32.xlu1 %v836_v43, %s1510_s10 }
 0x9af   : > { %v839_v44 = vpop.permute.xlu1 %838 }
 0x9b0   : > { %v841_v45 = vadd.f32 %v839_v44, %v418_v36 }
 0x9b2   : > { %1480 = vtanh.f32 %v841_v45 }
 0x9bf   : > { %v1481_v46 = vpop.eup %1480 }
 0x9c0   : > { %845 = vrot.lane.b32.xlu0 %v1481_v46, %s1511_s14 }
 0xa32   : > { %v846_v48 = vpop.permute.xlu0 %845 }
 0xa33   : > { %v848_v50 = vmul.f32 %v846_v48, %v843_v47 }
 0xa35   : > { %v850_v51 = vadd.f32 %v849_v49, %v848_v50 }
 0xa37   : > { %852 = vrot.lane.b32.xlu1 %v850_v51, %s1511_s14 }
 0xaa9   : > { %v853_v52 = vpop.permute.xlu1 %852 }
 0xaaa   : > { %855 = vst.msk [vmem:[%s1642_s17 + $0x18] sm:$0xff] %vm442_vm2, %v853_v52  ;;  %1421 = vmatmul.mubr.msk.f32.vlgmr.msra.gmra.mxu1 %vm442_vm2, %v853_v52 }
 0xaab   : > { %1435 = vmatpush3.msra.mxu1 %v1566_v1  ;;  %1442 = vmatprep.mubr.msk.f32.mxu1 %vm1509_vm0, %v1508_v0  ;;  %v423_v1 = vadd.f32 %v1627_v14, %v422_v26 }
 0xaac   : > { %1436 = vmatprep.subr.mxu1 %v1508_v0 }
 0xaad   : > { %1437 = vmatpush3.msra.mxu1 %v1568_v2 }
 0xaae   : > { %1438 = vmatprep.subr.mxu1 %v1508_v0 }
 0xaaf   : > { %1439 = vmatpush3.msra.mxu1 %v1573_v5 }
 0xab0   : > { %1440 = vmatprep.subr.mxu1 %v1508_v0 }
 0xab1   : > { %1441 = vmatpush3.msra.mxu1 %v1586_v7 }
 0xb6a   : > { %v924_v53 = vpop.f32.mrf.mxu1 }
 0xb6b   : > { %v925_v54 = vadd.f32 %v1619_v9, %v924_v53 }
 0xb6c   : > { %v1422_v55 = vpop.f32.mrf.mxu1 }
 0xb6d   : > { %936 = vrot.lane.b32.xlu0 %v925_v54, %s1510_s10  ;;  %v928_v56 = vadd.f32 %v925_v54, %v423_v1 }
 0xb6f   : > { %v1290_v57 = vmul.f32 -1.442695, %v928_v56 }
 0xb71   : > { %1482 = vpow2.f32 %v1290_v57 }
 0xb7e   : > { %v1483_v2 = vpop.eup %1482 }
 0xb7f   : > { %v932_v58 = vadd.f32 1.0, %v1483_v2 }
 0xb81   : > { %1484 = vrcp.f32 %v932_v58 }
 0xb8e   : > { %v1485_v59 = vpop.eup %1484 }
 0xb8f   : > { %v946_v62 = vsub.f32 1.0, %v1485_v59  ;;  %v952_v3 = vmul.f32 %v1485_v59, %v850_v51 }
 0xbdf   : > { %v937_v5 = vpop.permute.xlu0 %936 }
 0xbe0   : > { %v939_v0 = vmul.f32 %v1485_v59, %v937_v5 }
 0xbe2   : > { %941 = vrot.lane.b32.xlu1 %v939_v0, %s1510_s10 }
 0xc54   : > { %v942_v7 = vpop.permute.xlu1 %941 }
 0xc55   : > { %v944_v60 = vadd.f32 %v942_v7, %v423_v1 }
 0xc57   : > { %1486 = vtanh.f32 %v944_v60 }
 0xc64   : > { %v1487_v61 = vpop.eup %1486 }
 0xc65   : > { %948 = vrot.lane.b32.xlu0 %v1487_v61, %s1511_s14 }
 0xcd7   : > { %v949_v63 = vpop.permute.xlu0 %948 }
 0xcd8   : > { %v951_v4 = vmul.f32 %v949_v63, %v946_v62 }
 0xcda   : > { %v953_v6 = vadd.f32 %v952_v3, %v951_v4 }
 0xcdc   : > { %955 = vrot.lane.b32.xlu1 %v953_v6, %s1511_s14 }
 0xd4e   : > { %v956_v8 = vpop.permute.xlu1 %955 }
 0xd4f   : > { %958 = vst.msk [vmem:[%s1642_s17 + $0x20] sm:$0xff] %vm442_vm2, %v956_v8  ;;  %1432 = vmatmul.mubr.msk.f32.vlgmr.msra.gmra.mxu0 %vm442_vm2, %v956_v8 }
 0xe0f   : > { %v1027_v10 = vpop.f32.mrf.mxu0 }
 0xe10   : > { %v1028_v11 = vadd.f32 %v1619_v9, %v1027_v10 }
 0xe11   : > { %v1433_v12 = vpop.f32.mrf.mxu0 }
 0xe12   : > { %1039 = vrot.lane.b32.xlu0 %v1028_v11, %s1510_s10  ;;  %v1031_v15 = vadd.f32 %v1028_v11, %v428_v13 }
 0xe14   : > { %v1292_v16 = vmul.f32 -1.442695, %v1031_v15 }
 0xe16   : > { %1488 = vpow2.f32 %v1292_v16 }
 0xe23   : > { %v1489_v17 = vpop.eup %1488 }
 0xe24   : > { %v1035_v18 = vadd.f32 1.0, %v1489_v17 }
 0xe26   : > { %1490 = vrcp.f32 %v1035_v18 }
 0xe33   : > { %v1491_v19 = vpop.eup %1490 }
 0xe34   : > { %v1049_v25 = vsub.f32 1.0, %v1491_v19  ;;  %v1055_v27 = vmul.f32 %v1491_v19, %v953_v6 }
 0xe84   : > { %v1040_v20 = vpop.permute.xlu0 %1039 }
 0xe85   : > { %v1042_v21 = vmul.f32 %v1491_v19, %v1040_v20 }
 0xe87   : > { %1044 = vrot.lane.b32.xlu1 %v1042_v21, %s1510_s10 }
 0xef9   : > { %v1045_v22 = vpop.permute.xlu1 %1044 }
 0xefa   : > { %v1047_v23 = vadd.f32 %v1045_v22, %v428_v13 }
 0xefc   : > { %1492 = vtanh.f32 %v1047_v23 }
 0xf09   : > { %v1493_v24 = vpop.eup %1492 }
 0xf0a   : > { %1051 = vrot.lane.b32.xlu0 %v1493_v24, %s1511_s14 }
 0xf7c   : > { %v1052_v26 = vpop.permute.xlu0 %1051 }
 0xf7d   : > { %v1054_v28 = vmul.f32 %v1052_v26, %v1049_v25 }
 0xf7f   : > { %v1056_v29 = vadd.f32 %v1055_v27, %v1054_v28 }
 0xf81   : > { %1058 = vrot.lane.b32.xlu1 %v1056_v29, %s1511_s14 }
 0xff3   : > { %v1059_v31 = vpop.permute.xlu1 %1058 }
 0xff4   : > { %1061 = vst.msk [vmem:[%s1642_s17 + $0x28] sm:$0xff] %vm442_vm2, %v1059_v31  ;;  %1443 = vmatmul.mubr.msk.f32.vlgmr.msra.gmra.mxu1 %vm442_vm2, %v1059_v31 }
0x10b4   : > { %v1130_v32 = vpop.f32.mrf.mxu1 }
0x10b5   : > { %v1131_v33 = vadd.f32 %v1619_v9, %v1130_v32 }
0x10b6   : > { %v1444_v34 = vpop.f32.mrf.mxu1 }
0x10b7   : > { %1142 = vrot.lane.b32.xlu0 %v1131_v33, %s1510_s10  ;;  %v1134_v36 = vadd.f32 %v1131_v33, %v433_v35 }
0x10b9   : > { %v1294_v37 = vmul.f32 -1.442695, %v1134_v36 }
0x10bb   : > { %1494 = vpow2.f32 %v1294_v37 }
0x10c8   : > { %v1495_v38 = vpop.eup %1494 }
0x10c9   : > { %v1138_v39 = vadd.f32 1.0, %v1495_v38 }
0x10cb   : > { %1496 = vrcp.f32 %v1138_v39 }
0x10d8   : > { %v1497_v40 = vpop.eup %1496 }
0x10d9   : > { %v1152_v45 = vsub.f32 1.0, %v1497_v40  ;;  %v1158_v30 = vmul.f32 %v1497_v40, %v1056_v29 }
0x1129   : > { %v1143_v41 = vpop.permute.xlu0 %1142 }
0x112a   : > { %v1145_v42 = vmul.f32 %v1497_v40, %v1143_v41 }
0x112c   : > { %1147 = vrot.lane.b32.xlu1 %v1145_v42, %s1510_s10 }
0x119e   : > { %v1148_v43 = vpop.permute.xlu1 %1147 }
0x119f   : > { %v1150_v9 = vadd.f32 %v1148_v43, %v433_v35 }
0x11a1   : > { %1498 = vtanh.f32 %v1150_v9 }
0x11ae   : > { %v1499_v44 = vpop.eup %1498 }
0x11af   : > { %1154 = vrot.lane.b32.xlu0 %v1499_v44, %s1511_s14 }
0x1221   : > { %v1155_v14 = vpop.permute.xlu0 %1154 }
0x1222   : > { %v1157_v46 = vmul.f32 %v1155_v14, %v1152_v45 }
0x1224   : > { %v1159_v47 = vadd.f32 %v1158_v30, %v1157_v46 }
0x1226   : > { %1161 = vrot.lane.b32.xlu1 %v1159_v47, %s1511_s14 }
0x1298   : > { %v1162_v48 = vpop.permute.xlu1 %1161 }
0x1299   : > { %1164 = vst.msk [vmem:[%s1642_s17 + $0x30] sm:$0xff] %vm442_vm2, %v1162_v48 }
0x129a PF: > { %s15_s18 = sadd.s32 1, %s1506_s18  }
0x129b   : > { %p12_p4 = scmp.ge.s32.totalorder %s15_s18, 4  }
0x129d   :  { %14 = sbr.rel (!%p12_p4) target bundleno = 1 (0x1), region = 82 }

// kernel: seq2seq_forward.3
= control target key start
LH: loop header
LB: loop body
LE: loop exit
PB: predicated region body
PF: predicated region fallthrough
CT: control target
= control target key end

     0   :  { %s2604_s0 = inlined_call_operand.vmem [shape: s32[7], index: 0, kind: input, shape index: {}]   ;;  %s2605_s1 = inlined_call_operand.vmem [shape: f32[7,8,128], index: 1, kind: input, shape index: {}]   ;;  %s2606_s2 = inlined_call_operand.vmem [shape: f32[8,32], index: 2, kind: input, shape index: {}]   ;;  %s2607_s3 = inlined_call_operand.vmem [shape: f32[8,7,64], index: 3, kind: input, shape index: {}]   ;;  %s2608_s4 = inlined_call_operand.vmem [shape: f32[8,7,32], index: 4, kind: input, shape index: {}]   ;;  %s2609_s5 = inlined_call_operand.vmem [shape: f32[128,16], index: 5, kind: input, shape index: {}]   ;;  %s2610_s6 = inlined_call_operand.vmem [shape: f32[32,32], index: 6, kind: input, shape index: {}]   ;;  %s2611_s7 = inlined_call_operand.vmem [shape: f32[1,32], index: 7, kind: input, shape index: {}]   ;;  %s2612_s8 = inlined_call_operand.vmem [shape: f32[16,96], index: 8, kind: input, shape index: {}]   ;;  %s2613_s9 = inlined_call_operand.vmem [shape: f32[64,96], index: 9, kind: input, shape index: {}]   ;;  %s2614_s10 = inlined_call_operand.vmem [shape: f32[1,96], index: 10, kind: input, shape index: {}]   ;;  %s2615_s11 = inlined_call_operand.vmem [shape: f32[32,96], index: 11, kind: input, shape index: {}]   ;;  %s2616_s12 = inlined_call_operand.vmem [shape: f32[1,96], index: 12, kind: input, shape index: {}]   ;;  %s2617_s13 = inlined_call_operand.vmem [shape: f32[32,128], index: 13, kind: input, shape index: {}]   ;;  %s2618_s14 = inlined_call_operand.vmem [shape: f32[64,128], index: 14, kind: input, shape index: {}]   ;;  %s2619_s15 = inlined_call_operand.vmem [shape: f32[16,128], index: 15, kind: input, shape index: {}]   ;;  %s2620_s16 = inlined_call_operand.vmem [shape: f32[1,128], index: 16, kind: input, shape index: {}]   ;;  %s2621_s17 = inlined_call_operand.vmem [shape: f32[7,8,128], index: 17, kind: output, shape index: {}]  }
   0x1   :  { %2622 = sst [smem:[#allocation8_spill]] %s2604_s0 }
   0x2   :  { %2623 = sst [smem:[#allocation9_spill]] %s2605_s1 }
   0x3   :  { %2624 = sst [smem:[#allocation10_spill]] %s2614_s10 }
   0x4   :  { %s2625_s26 = sld [smem:[#allocation8_spill]] }
   0xa   :  { %s22_s10 = sshll.u32 %s2625_s26, 4  ;;  %s23_s10 = int_to_ptr.vmem [resolvable:$true] %s22_s10 }
   0xb   :  { %s2022_s27 = scalar_lea.vmem %s23_s10, 16  ;;  %p2027_p1 = scmp.lt.s32.totalorder %s23_s10, %s23_s10 }
   0xc   :  { %p2023_p0 = scmp.ne.s32.totalorder %s23_s10, %s2022_s27  ;;  %p2028_p2 = scmp.lt.s32.totalorder %s2022_s27, %s2022_s27 }
   0xe   :  { %p2029_p3 = por %p2028_p2, %p2027_p1 }
  0x10   :  { %p2030_p4 = pnand %p2029_p3, %p2023_p0 }
  0x12   :  { %2033 = shalt.err (!%p2030_p4)  }
  0x13   :  { %s2044_s28 = smov [#allocation6]  }
  0x14   :  { %25 = dma.vmem_to_smem %s23_s10, 16, %s2044_s28, [#allocation5] }
  0x15   :  { %2038 = dma.done.wait [#allocation5], 16 }
  0x16   :  { %2039 = vsyncadd [#allocation5], 4294967280 }
  0x17   :  { %27 = sfence }
  0x18   :  { %s2146_s29 = smov 0  }
  0x19 LB: > { %s2152_s0 = sadd.s32 4294967295, %s2042_s29   ;;  %p1768_p5 = scmp.ge.s32.totalorder %s2042_s29, 1  ;;  %s2042_s29 = sphi %s2146_s29, %s33_s29  }
  0x1a   : > { %p454_p6 = scmp.lt.s32.totalorder %s2042_s29, 8 }
  0x1c   : > { %p455_p7 = pnand %p1768_p5, %p454_p6 }
  0x1d   : > { %p1769_p8 = scmp.ne.s32.totalorder (!%p455_p7), %s2152_s0, 0 }
  0x1e   : > { %458 = sbr.rel (%p455_p7) target bundleno = 2241 (0x8c1), region = 84 }
  0x23   : > { %497 = sbr.rel (%p1769_p8) target bundleno = 47 (0x2f), region = 88 }
  0x28   : > { %v498_v0 = vld [vmem:[%s2606_s2] sm:$0xff]  ;;  %vm499_vm0 = vcmask 261120   ;;  %v502_v1 = vlaneseq  ;;  %v2045_v2 = vmov 0.0  }
  0x29   : > { %500 = vst.msk [vmem:[#allocation2] sm:$0xff] %vm499_vm0, %v498_v0  ;;  %501 = vst [vmem:[#allocation3] sm:$0xff] %v2045_v2 }
  0x2a   : > { %v503_v3 = vand.u32 127, %v502_v1 }
  0x2c   : > { %v504_v4 = vcvt.s32.f32 %v503_v3 }
  0x2e   : > { %505 = vst [vmem:[#allocation4] sm:$0xff] %v504_v4 }
  0x2f PF: > { %v610_v5 = vld [vmem:[%s2610_s6 + $0x18] sm:$0xff]  ;;  %v2046_v6 = vmov 0.0   ;;  %v609_v7 = vld [vmem:[%s2610_s6 + $0x10] sm:$0xff]  ;;  %vm2047_vm1 = vmmov 0   ;;  %v608_v8 = vld [vmem:[%s2610_s6 + $0x8] sm:$0xff]  ;;  %vm611_vm2 = vcmask 261120   ;;  %v690_v13 = vlaneseq }
  0x30   : > { %1877 = vmatprep.subr.mxu1 %v2046_v6  ;;  %1885 = vmatprep.mubr.msk.f32.mxu1 %vm2047_vm1, %v2046_v6  ;;  %v607_v9 = vld [vmem:[%s2610_s6] sm:$0xff]  ;;  %v2048_v11 = vmov 1966171168   ;;  %v736_v34 = vld [vmem:[%s2608_s4 + $0x8] sm:$0x7f]  ;;  %vm814_vm3 = vcmask 260096  }
  0x31   : > { %1878 = vmatpush3.msra.mxu1 %v610_v5  ;;  %1842 = vmatprep.subr.mxu0 %v2046_v6  ;;  %v2180_v10 = vld [vmem:[#allocation2] sm:$0xff]  ;;  %v688_v12 = vunpack.c.l.s4 %v2048_v11  ;;  %v2189_v15 = vshrl.u32 %v690_v13, 7  ;;  %v737_v35 = vld [vmem:[%s2608_s4 + $0x10] sm:$0x7f]  ;;  %v738_v37 = vld [vmem:[%s2608_s4 + $0x18] sm:$0x7f] }
  0x32   : > { %1879 = vmatprep.subr.mxu1 %v2046_v6  ;;  %1874 = vmatprep.mubr.msk.f32.mxu0 %vm2047_vm1, %v2046_v6  ;;  %v735_v29 = vld [vmem:[%s2608_s4] sm:$0x7f]  ;;  %v740_v45 = vld [vmem:[%s2608_s4 + $0x28] sm:$0x7f]  ;;  %v741_v49 = vld [vmem:[%s2608_s4 + $0x30] sm:$0x7f] }
  0x33   : > { %1880 = vmatpush3.msra.mxu1 %v609_v7  ;;  %v689_v14 = vunpack.c.0.s8 %v688_v12  ;;  %v2193_v20 = vsub.s32 0, %v2189_v15  ;;  %v739_v38 = vld [vmem:[%s2608_s4 + $0x20] sm:$0x7f]  ;;  %v742_v54 = vld [vmem:[%s2608_s4 + $0x38] sm:$0x7f]  ;;  %vm881_vm4 = vcmask 1041409  }
  0x34   : > { %1881 = vmatprep.subr.mxu1 %v2046_v6  ;;  %v1772_v57 = vld [vmem:[%s2611_s7] ss:$0 sm:$0xff]  ;;  %vm883_vm5 = vcmask 1042434   ;;  %vm885_vm6 = vcmask 1043459   ;;  %vm887_vm7 = vcmask 1044484   ;;  %vm889_vm8 = vcmask 1045509  }
  0x35   : > { %1882 = vmatpush3.msra.mxu1 %v608_v8  ;;  %v692_v16 = vsub.s32 %v689_v14, %v2189_v15  ;;  %vm891_vm9 = vcmask 1046534   ;;  %vm893_vm10 = vcmask 1047559   ;;  %vm896_vm11 = vcmask 56320   ;;  %s506_s1 = sld [smem:[#allocation6 + %s2152_s0]]  ;;  %s1770_s22 = sshll.u32 %s2152_s0, 3 }
  0x36   : > { %1883 = vmatprep.subr.mxu1 %v2046_v6  ;;  %s2626_s30 = sld [smem:[#allocation9_spill]]  ;;  %vm1146_vm12 = vcmask 522240   ;;  %vm1228_vm13 = vcmask 523264   ;;  %vm1301_vm14 = vcmask 130048   ;;  %s1731_s23 = scalar_lea.vmem %s2621_s17, %s1770_s22 }
  0x37   : > { %1884 = vmatpush3.msra.mxu1 %v607_v9  ;;  %s2627_s10 = sld [smem:[#allocation10_spill]] }
  0x38   : > { %1886 = vmatmul.mubr.msk.f32.vlgmr.msra.gmra.mxu1 %vm611_vm2, %v2180_v10  ;;  %1888 = vmatprep.subr.mxu1 %v2046_v6 }
  0x39   : > { %1904 = vmatprep.mubr.msk.f32.mxu1 %vm2047_vm1, %v2046_v6 }
  0x3b   : > { %p507_p9 = scmp.gt.s32.totalorder %s506_s1, 0 }
  0x3c   : > { %s511_s18 = scalar_lea.vmem %s2626_s30, %s1770_s22 }
  0x3d   : > { %s508_s28 = scalar_select %p507_p9, 1, 0 }
  0x3f   : > { %s509_s1 = scvt.s32.f32 %s508_s28 }
  0x41   : > { %s515_s25 = ssub.f32 1.0, %s509_s1 }
  0xf8   : > { %v681_v17 = vpop.f32.mrf.mxu1 }
  0xf9   : > { %v686_v18 = vcombine.high %v681_v17, %v681_v17  ;;  %v693_v19 = vrot.slane %v681_v17, %v692_v16 }
  0xfa   : > { %v1887_v21 = vpop.f32.mrf.mxu1 }
  0xfb   : > { %v700_v22 = vrot.slane %v686_v18, %v692_v16  ;;  %v701_v23 = vcombine.high %v693_v19, %v693_v19  ;;  %v709_v24 = vrot.slane %v693_v19, %v692_v16 }
  0xfd   : > { %v702_v25 = vcombine.high %v700_v22, %v700_v22  ;;  %v716_v26 = vrot.slane %v700_v22, %v692_v16  ;;  %v723_v27 = vrot.slane %v701_v23, %v692_v16  ;;  %v731_v28 = vcombine.high %v709_v24, %v709_v24 }
  0xfe   : > { %v746_v30 = vrot.slane %v709_v24, %v2193_v20  ;;  %v848_v23 = vand.u32 127, %v690_v13 }
  0xff   : > { %v730_v31 = vrot.slane %v702_v25, %v692_v16  ;;  %v732_v32 = vcombine.high %v716_v26, %v716_v26  ;;  %v733_v33 = vcombine.high %v723_v27, %v723_v27  ;;  %v750_v36 = vrot.slane %v723_v27, %v2193_v20 }
 0x100   : > { %v754_v39 = vrot.slane %v731_v28, %v2193_v20  ;;  %v762_v40 = vrot.slane %v716_v26, %v2193_v20  ;;  %v783_v41 = vadd.f32 %v746_v30, %v735_v29  ;;  %v2240_v25 = vsub.s32 %v848_v23, %v2189_v15 }
 0x101   : > { %v734_v42 = vcombine.high %v730_v31, %v730_v31  ;;  %v758_v43 = vrot.slane %v733_v33, %v2193_v20  ;;  %v766_v44 = vrot.slane %v730_v31, %v2193_v20  ;;  %v770_v46 = vrot.slane %v732_v32, %v2193_v20 }
 0x102   : > { %v784_v47 = vadd.f32 %v750_v36, %v736_v34  ;;  %v785_v48 = vadd.f32 %v754_v39, %v737_v35  ;;  %1981 = vtanh.f32 %v783_v41  ;;  %v787_v51 = vadd.f32 %v762_v40, %v739_v38 }
 0x103   : > { %v786_v50 = vadd.f32 %v758_v43, %v738_v37  ;;  %v774_v52 = vrot.slane %v734_v42, %v2193_v20  ;;  %v788_v53 = vadd.f32 %v766_v44, %v740_v45  ;;  %v789_v55 = vadd.f32 %v770_v46, %v741_v49 }
 0x104   : > { %1983 = vtanh.f32 %v784_v47  ;;  %v907_v49 = vsub.s32 1, %v2189_v15 }
 0x105   : > { %1985 = vtanh.f32 %v785_v48  ;;  %v790_v56 = vadd.f32 %v774_v52, %v742_v54  ;;  %v2049_v48 = vmov 0  }
 0x106   : > { %1987 = vtanh.f32 %v786_v50  ;;  %1980 = vset.pattern.permute.xlu0 %v2049_v48  ;;  %1979 = vset.pattern.permute.xlu1 %v2049_v48  ;;  %v911_v50 = vsub.s32 2, %v2189_v15 }
 0x107   : > { %1989 = vtanh.f32 %v787_v51  ;;  %v915_v51 = vsub.s32 3, %v2189_v15 }
 0x108   : > { %1991 = vtanh.f32 %v788_v53 }
 0x109   : > { %1993 = vtanh.f32 %v789_v55 }
 0x10a   : > { %1995 = vtanh.f32 %v790_v56  ;;  %v919_v56 = vsub.s32 4, %v2189_v15 }
 0x10f   : > { %v1982_v58 = vpop.eup %1981 }
 0x110   : > { %v806_v59 = vmul.f32 %v1982_v58, %v1772_v57 }
 0x111   : > { %v1984_v60 = vpop.eup %1983 }
 0x112   : > { %v1986_v61 = vpop.eup %1985  ;;  %v815_v62 = vsel %vm814_vm3, %v806_v59, 0.0  ;;  %v807_v63 = vmul.f32 %v1984_v60, %v1772_v57 }
 0x113   : > { %v1988_v0 = vpop.eup %1987  ;;  %816 = vadd.xlane.f32.xlu0 %v815_v62  ;;  %v808_v1 = vmul.f32 %v1986_v61, %v1772_v57 }
 0x114   : > { %v1990_v2 = vpop.eup %1989  ;;  %v809_v4 = vmul.f32 %v1988_v0, %v1772_v57  ;;  %v818_v7 = vsel %vm814_vm3, %v807_v63, 0.0  ;;  %v923_v63 = vsub.s32 5, %v2189_v15 }
 0x115   : > { %v821_v3 = vsel %vm814_vm3, %v808_v1, 0.0  ;;  %v1992_v5 = vpop.eup %1991  ;;  %v810_v8 = vmul.f32 %v1990_v2, %v1772_v57 }
 0x116   : > { %822 = vadd.xlane.f32.xlu1 %v821_v3  ;;  %v1994_v9 = vpop.eup %1993  ;;  %v824_v11 = vsel %vm814_vm3, %v809_v4, 0.0  ;;  %v811_v12 = vmul.f32 %v1992_v5, %v1772_v57  ;;  %v927_v3 = vsub.s32 6, %v2189_v15 }
 0x117   : > { %819 = vadd.xlane.f32.xlu0 %v818_v7  ;;  %v1996_v14 = vpop.eup %1995  ;;  %v827_v16 = vsel %vm814_vm3, %v810_v8, 0.0  ;;  %v812_v17 = vmul.f32 %v1994_v9, %v1772_v57  ;;  %v931_v8 = vsub.s32 7, %v2189_v15  ;;  %v1211_v15 = vld [vmem:[%s2613_s9 + $0x30] sm:$0xff] }
 0x118   : > { %v830_v18 = vsel %vm814_vm3, %v811_v12, 0.0  ;;  %v813_v19 = vmul.f32 %v1996_v14, %v1772_v57 }
 0x119   : > { %v833_v21 = vsel %vm814_vm3, %v812_v17, 0.0 }
 0x11a   : > { %825 = vadd.xlane.f32.xlu1 %v824_v11  ;;  %v836_v22 = vsel %vm814_vm3, %v813_v19, 0.0 }
 0x11b   : > { %828 = vadd.xlane.f32.xlu0 %v827_v16 }
 0x11e   : > { %831 = vadd.xlane.f32.xlu1 %v830_v18 }
 0x11f   : > { %834 = vadd.xlane.f32.xlu0 %v833_v21 }
 0x122   : > { %837 = vadd.xlane.f32.xlu1 %v836_v22 }
 0x19c   : > { %v817_v24 = vpop.xlane.xlu0 %816 }
 0x19d   : > { %v852_v28 = vrot.slane %v817_v24, %v2240_v25 }
 0x19f   : > { %v823_v26 = vpop.xlane.xlu1 %822 }
 0x1a0   : > { %v820_v27 = vpop.xlane.xlu0 %819  ;;  %v860_v30 = vrot.slane %v823_v26, %v2240_v25 }
 0x1a1   : > { %v856_v29 = vrot.slane %v820_v27, %v2240_v25 }
 0x1a3   : > { %v882_v31 = vsel %vm881_vm4, %v856_v29, %v852_v28  ;;  %v826_v32 = vpop.xlane.xlu1 %825 }
 0x1a4   : > { %v884_v13 = vsel %vm883_vm5, %v860_v30, %v882_v31  ;;  %v864_v33 = vrot.slane %v826_v32, %v2240_v25  ;;  %v829_v34 = vpop.xlane.xlu0 %828  ;;  %v535_v31 = vld [vmem:[%s2609_s5 + $0x78] sm:$0xff] }
 0x1a5   : > { %v868_v35 = vrot.slane %v829_v34, %v2240_v25  ;;  %1843 = vmatpush3.msra.mxu0 %v535_v31 }
 0x1a6   : > { %v886_v36 = vsel %vm885_vm6, %v864_v33, %v884_v13  ;;  %1844 = vmatprep.subr.mxu0 %v2046_v6  ;;  %v533_v13 = vld [vmem:[%s2609_s5 + $0x68] sm:$0xff]  ;;  %v532_v33 = vld [vmem:[%s2609_s5 + $0x60] sm:$0xff] }
 0x1a7   : > { %v888_v37 = vsel %vm887_vm7, %v868_v35, %v886_v36  ;;  %v832_v38 = vpop.xlane.xlu1 %831  ;;  %v530_v35 = vld [vmem:[%s2609_s5 + $0x50] sm:$0xff]  ;;  %v529_v36 = vld [vmem:[%s2609_s5 + $0x48] sm:$0xff] }
 0x1a8   : > { %v872_v39 = vrot.slane %v832_v38, %v2240_v25  ;;  %v835_v40 = vpop.xlane.xlu0 %834 }
 0x1a9   : > { %v876_v41 = vrot.slane %v835_v40, %v2240_v25 }
 0x1aa   : > { %v890_v42 = vsel %vm889_vm8, %v872_v39, %v888_v37  ;;  %v528_v37 = vld [vmem:[%s2609_s5 + $0x40] sm:$0xff]  ;;  %v526_v39 = vld [vmem:[%s2609_s5 + $0x30] sm:$0xff] }
 0x1ab   : > { %v838_v43 = vpop.xlane.xlu1 %837  ;;  %v892_v44 = vsel %vm891_vm9, %v876_v41, %v890_v42  ;;  %v524_v41 = vld [vmem:[%s2609_s5 + $0x20] sm:$0xff] }
 0x1ac   : > { %v880_v45 = vrot.slane %v838_v43, %v2240_v25  ;;  %v512_v42 = vld [vmem:[%s511_s18] sm:$0xff] }
 0x1ae   : > { %v894_v46 = vsel %vm893_vm10, %v880_v45, %v892_v44  ;;  %v516_v44 = vld [vmem:[#allocation3] sm:$0xff]  ;;  %v517_v45 = vstv %s515_s25  ;;  %s2050_s25 = smov 64  }
 0x1af   : > { %v897_v47 = vsel %vm896_vm11, %v894_v46, -inf  ;;  %v523_v46 = vld [vmem:[%s2609_s5 + $0x18] sm:$0xff] }
 0x1b0   : > { %898 = vmax.xlane.f32.xlu0 %v897_v47  ;;  %v522_v47 = vld [vmem:[%s2609_s5 + $0x10] sm:$0xff] }
 0x239   : > { %v899_v52 = vpop.xlane.xlu0 %898 }
 0x23a   : > { %v904_v53 = vrot.slane %v899_v52, %v2193_v20  ;;  %v908_v54 = vrot.slane %v899_v52, %v907_v49  ;;  %v912_v55 = vrot.slane %v899_v52, %v911_v50  ;;  %v916_v57 = vrot.slane %v899_v52, %v915_v51 }
 0x23b   : > { %v920_v0 = vrot.slane %v899_v52, %v919_v56  ;;  %v924_v4 = vrot.slane %v899_v52, %v923_v63  ;;  %v928_v9 = vrot.slane %v899_v52, %v927_v3  ;;  %v932_v14 = vrot.slane %v899_v52, %v931_v8 }
 0x23c   : > { %v941_v58 = vsub.f32 %v817_v24, %v904_v53  ;;  %v942_v59 = vsub.f32 %v820_v27, %v908_v54  ;;  %v943_v60 = vsub.f32 %v823_v26, %v912_v55  ;;  %v944_v1 = vsub.f32 %v826_v32, %v916_v57  ;;  %v534_v32 = vld [vmem:[%s2609_s5 + $0x70] sm:$0xff]  ;;  %v521_v53 = vld [vmem:[%s2609_s5 + $0x8] sm:$0xff]  ;;  %v520_v54 = vld [vmem:[%s2609_s5] sm:$0xff] }
 0x23d   : > { %v945_v5 = vsub.f32 %v829_v34, %v920_v0  ;;  %v946_v11 = vsub.f32 %v832_v38, %v924_v4  ;;  %v947_v16 = vsub.f32 %v835_v40, %v928_v9  ;;  %v948_v21 = vsub.f32 %v838_v43, %v932_v14  ;;  %1845 = vmatpush3.msra.mxu0 %v534_v32  ;;  %v531_v34 = vld [vmem:[%s2609_s5 + $0x58] sm:$0xff]  ;;  %v525_v40 = vld [vmem:[%s2609_s5 + $0x28] sm:$0xff] }
 0x23e   : > { %v949_v61 = vmul.f32 1.442695, %v941_v58  ;;  %v951_v62 = vmul.f32 1.442695, %v942_v59  ;;  %v953_v2 = vmul.f32 1.442695, %v943_v60  ;;  %1846 = vmatprep.subr.mxu0 %v2046_v6  ;;  %v513_v43 = vstv %s509_s1 }
 0x23f   : > { %v955_v7 = vmul.f32 1.442695, %v944_v1  ;;  %v957_v12 = vmul.f32 1.442695, %v945_v5  ;;  %v959_v17 = vmul.f32 1.442695, %v946_v11  ;;  %1847 = vmatpush3.msra.mxu0 %v533_v13  ;;  %v514_v48 = vmul.f32 %v513_v43, %v512_v42 }
 0x240   : > { %1997 = vpow2.f32 %v949_v61  ;;  %v961_v22 = vmul.f32 1.442695, %v947_v16  ;;  %v963_v24 = vmul.f32 1.442695, %v948_v21  ;;  %1848 = vmatprep.subr.mxu0 %v2046_v6  ;;  %v527_v38 = vld [vmem:[%s2609_s5 + $0x38] sm:$0xff]  ;;  %v518_v52 = vmul.f32 %v517_v45, %v516_v44  ;;  %v1207_v43 = vld [vmem:[%s2613_s9 + $0x10] sm:$0xff] }
 0x241   : > { %1999 = vpow2.f32 %v951_v62  ;;  %1849 = vmatpush3.msra.mxu0 %v532_v33  ;;  %v1500_v42 = vld [vmem:[%s2618_s14 + $0x18] sm:$0xff]  ;;  %v1499_v44 = vld [vmem:[%s2618_s14 + $0x10] sm:$0xff]  ;;  %v1206_v45 = vld [vmem:[%s2613_s9 + $0x8] sm:$0xff]  ;;  %s2051_s1 = smov 96  }
 0x242   : > { %2001 = vpow2.f32 %v953_v2  ;;  %1850 = vmatprep.subr.mxu0 %v2046_v6  ;;  %v519_v55 = vadd.f32 %v518_v52, %v514_v48  ;;  %v1205_v48 = vld [vmem:[%s2613_s9] sm:$0xff] }
 0x243   : > { %2003 = vpow2.f32 %v955_v7  ;;  %1851 = vmatpush3.msra.mxu0 %v531_v34  ;;  %v1497_v52 = vld [vmem:[%s2618_s14] sm:$0xff] }
 0x244   : > { %2005 = vpow2.f32 %v957_v12  ;;  %1852 = vmatprep.subr.mxu0 %v2046_v6 }
 0x245   : > { %2007 = vpow2.f32 %v959_v17  ;;  %1853 = vmatpush3.msra.mxu0 %v530_v35 }
 0x246   : > { %2009 = vpow2.f32 %v961_v22  ;;  %1854 = vmatprep.subr.mxu0 %v2046_v6 }
 0x247   : > { %2011 = vpow2.f32 %v963_v24  ;;  %1855 = vmatpush3.msra.mxu0 %v529_v36 }
 0x248   : > { %1856 = vmatprep.subr.mxu0 %v2046_v6 }
 0x249   : > { %1857 = vmatpush3.msra.mxu0 %v528_v37 }
 0x24a   : > { %1858 = vmatprep.subr.mxu0 %v2046_v6 }
 0x24b   : > { %1859 = vmatpush3.msra.mxu0 %v527_v38 }
 0x24c   : > { %1860 = vmatprep.subr.mxu0 %v2046_v6 }
 0x24d   : > { %v2280_v18 = vpop.eup %1997  ;;  %1861 = vmatpush3.msra.mxu0 %v526_v39 }
 0x24e   : > { %v2282_v19 = vpop.eup %1999  ;;  %974 = vperm.xlu1 %1979, %v2280_v18   ;;  %1862 = vmatprep.subr.mxu0 %v2046_v6 }
 0x24f   : > { %977 = vperm.xlu0 %1980, %v2282_v19   ;;  %v2286_v23 = vpop.eup %2001  ;;  %1863 = vmatpush3.msra.mxu0 %v525_v40 }
 0x250   : > { %v2289_v26 = vpop.eup %2003  ;;  %1864 = vmatprep.subr.mxu0 %v2046_v6 }
 0x251   : > { %v2292_v27 = vpop.eup %2005  ;;  %1865 = vmatpush3.msra.mxu0 %v524_v41  ;;  %v1208_v41 = vld [vmem:[%s2613_s9 + $0x18] sm:$0xff] }
 0x252   : > { %980 = vperm.xlu1 %1979, %v2286_v23   ;;  %v2295_v28 = vpop.eup %2007  ;;  %1866 = vmatprep.subr.mxu0 %v2046_v6 }
 0x253   : > { %v2298_v29 = vpop.eup %2009  ;;  %1867 = vmatpush3.msra.mxu0 %v523_v46  ;;  %v1498_v46 = vld [vmem:[%s2618_s14 + $0x8] sm:$0xff] }
 0x254   : > { %v2301_v30 = vpop.eup %2011  ;;  %1868 = vmatprep.subr.mxu0 %v2046_v6 }
 0x255   : > { %1869 = vmatpush3.msra.mxu0 %v522_v47 }
 0x256   : > { %983 = vperm.xlu1 %1979, %v2289_v26   ;;  %1870 = vmatprep.subr.mxu0 %v2046_v6 }
 0x257   : > { %1871 = vmatpush3.msra.mxu0 %v521_v53 }
 0x258   : > { %1872 = vmatprep.subr.mxu0 %v2046_v6 }
 0x259   : > { %1873 = vmatpush3.msra.mxu0 %v520_v54 }
 0x25a   : > { %986 = vperm.xlu1 %1979, %v2292_v27   ;;  %1875 = vmatmul.mubr.f32.vlgmr.msra.gmra.mxu0 %v519_v55  ;;  %v1091_v55 = vld [vmem:[%s2607_s3 + $0x8] sm:$0x7f] }
 0x25b   : > { %1925 = vmatprep.subr.mxu0 %v2046_v6  ;;  %1941 = vmatprep.mubr.msk.f32.mxu0 %vm2047_vm1, %v2046_v6 }
 0x25e   : > { %989 = vperm.xlu1 %1979, %v2295_v28  }
 0x262   : > { %992 = vperm.xlu1 %1979, %v2298_v29  }
 0x266   : > { %995 = vperm.xlu1 %1979, %v2301_v30  }
 0x2c9   : > { %v975_v57 = vpop.permute.xlu1 %974 }
 0x2ca   : > { %v978_v61 = vpop.permute.xlu0 %977  ;;  %v1000_v1 = vrot.slane %v975_v57, %v2240_v25 }
 0x2cb   : > { %v1004_v0 = vrot.slane %v978_v61, %v2240_v25 }
 0x2cd   : > { %v981_v58 = vpop.permute.xlu1 %980  ;;  %v1029_v9 = vsel %vm881_vm4, %v1004_v0, %v1000_v1  ;;  %v1093_v1 = vld [vmem:[%s2607_s3 + $0x18] sm:$0x7f] }
 0x2ce   : > { %v1008_v2 = vrot.slane %v981_v58, %v2240_v25  ;;  %v1090_v58 = vld [vmem:[%s2607_s3] sm:$0x7f] }
 0x2d0   : > { %v1030_v12 = vsel %vm883_vm5, %v1008_v2, %v1029_v9 }
 0x2d1   : > { %v984_v59 = vpop.permute.xlu1 %983 }
 0x2d2   : > { %v1012_v4 = vrot.slane %v984_v59, %v2240_v25  ;;  %v1092_v59 = vld [vmem:[%s2607_s3 + $0x10] sm:$0x7f] }
 0x2d4   : > { %v1031_v16 = vsel %vm885_vm6, %v1012_v4, %v1030_v12  ;;  %v1094_v12 = vld [vmem:[%s2607_s3 + $0x20] sm:$0x7f] }
 0x2d5   : > { %v987_v60 = vpop.permute.xlu1 %986 }
 0x2d6   : > { %v1016_v5 = vrot.slane %v987_v60, %v2240_v25 }
 0x2d8   : > { %v1032_v17 = vsel %vm887_vm7, %v1016_v5, %v1031_v16 }
 0x2d9   : > { %v990_v62 = vpop.permute.xlu1 %989 }
 0x2da   : > { %v1020_v11 = vrot.slane %v990_v62, %v2240_v25 }
 0x2dc   : > { %v1033_v22 = vsel %vm889_vm8, %v1020_v11, %v1032_v17 }
 0x2dd   : > { %v993_v7 = vpop.permute.xlu1 %992 }
 0x2de   : > { %v1024_v14 = vrot.slane %v993_v7, %v2240_v25 }
 0x2e0   : > { %v1034_v31 = vsel %vm891_vm9, %v1024_v14, %v1033_v22 }
 0x2e1   : > { %v996_v21 = vpop.permute.xlu1 %995 }
 0x2e2   : > { %v1028_v24 = vrot.slane %v996_v21, %v2240_v25 }
 0x2e4   : > { %v1035_v32 = vsel %vm893_vm10, %v1028_v24, %v1034_v31 }
 0x2e5   : > { %v1037_v13 = vsel %vm896_vm11, %v1035_v32, 0.0  ;;  %v1095_v32 = vld [vmem:[%s2607_s3 + $0x28] sm:$0x7f] }
 0x2e6   : > { %1038 = vadd.xlane.f32.xlu1 %v1037_v13 }
 0x31a   : > { %v2468_v47 = vpop.f32.mrf.mxu0 }
 0x31c   : > { %v1876_v53 = vpop.f32.mrf.mxu0 }
 0x36f   : > { %v1039_v33 = vpop.xlane.xlu1 %1038 }
 0x370   : > { %2013 = vrcp.f32 %v1039_v33 }
 0x37d   : > { %v2014_v34 = vpop.eup %2013 }
 0x37e   : > { %v1045_v35 = vrot.slane %v2014_v34, %v2193_v20  ;;  %v1049_v37 = vrot.slane %v2014_v34, %v907_v49  ;;  %v1053_v38 = vrot.slane %v2014_v34, %v911_v50  ;;  %v1057_v40 = vrot.slane %v2014_v34, %v915_v51 }
 0x380   : > { %v1082_v36 = vmul.f32 %v2280_v18, %v1045_v35  ;;  %v1083_v25 = vmul.f32 %v2282_v19, %v1049_v37  ;;  %v1084_v39 = vmul.f32 %v2286_v23, %v1053_v38  ;;  %v1085_v20 = vmul.f32 %v2289_v26, %v1057_v40  ;;  %v1096_v40 = vld [vmem:[%s2607_s3 + $0x30] sm:$0x7f] }
 0x381   : > { %v1061_v18 = vrot.slane %v2014_v34, %v919_v56  ;;  %v1065_v19 = vrot.slane %v2014_v34, %v923_v63  ;;  %v1069_v23 = vrot.slane %v2014_v34, %v927_v3  ;;  %v1073_v26 = vrot.slane %v2014_v34, %v931_v8  ;;  %v1212_v63 = vld [vmem:[%s2613_s9 + $0x38] sm:$0xff]  ;;  %v1503_v3 = vld [vmem:[%s2618_s14 + $0x30] sm:$0xff]  ;;  %v1210_v8 = vld [vmem:[%s2613_s9 + $0x28] sm:$0xff] }
 0x382   : > { %1100 = vperm.xlu0 %1980, %v1082_v36   ;;  %1889 = vmatpush3.msra.mxu1 %v1212_v63 }
 0x383   : > { %v1086_v49 = vmul.f32 %v2292_v27, %v1061_v18  ;;  %v1087_v50 = vmul.f32 %v2295_v28, %v1065_v19  ;;  %v1088_v51 = vmul.f32 %v2298_v29, %v1069_v23  ;;  %v1089_v56 = vmul.f32 %v2301_v30, %v1073_v26  ;;  %v1504_v27 = vld [vmem:[%s2618_s14 + $0x38] sm:$0xff]  ;;  %1890 = vmatprep.subr.mxu1 %v2046_v6  ;;  %v1502_v28 = vld [vmem:[%s2618_s14 + $0x28] sm:$0xff]  ;;  %v1209_v29 = vld [vmem:[%s2613_s9 + $0x20] sm:$0xff] }
 0x384   : > { %1926 = vmatpush3.msra.mxu0 %v1504_v27  ;;  %1891 = vmatpush3.msra.mxu1 %v1211_v15  ;;  %v1501_v30 = vld [vmem:[%s2618_s14 + $0x20] sm:$0xff]  ;;  %v1097_v27 = vld [vmem:[%s2607_s3 + $0x38] sm:$0x7f] }
 0x385   : > { %1927 = vmatprep.subr.mxu0 %v2046_v6  ;;  %1892 = vmatprep.subr.mxu1 %v2046_v6 }
 0x386   : > { %1105 = vperm.xlu0 %1980, %v1083_v25   ;;  %1928 = vmatpush3.msra.mxu0 %v1503_v3 }
 0x387   : > { %1893 = vmatpush3.msra.mxu1 %v1210_v8  ;;  %1929 = vmatprep.subr.mxu0 %v2046_v6 }
 0x388   : > { %1894 = vmatprep.subr.mxu1 %v2046_v6  ;;  %1930 = vmatpush3.msra.mxu0 %v1502_v28 }
 0x389   : > { %1895 = vmatpush3.msra.mxu1 %v1209_v29  ;;  %1931 = vmatprep.subr.mxu0 %v2046_v6 }
 0x38a   : > { %1110 = vperm.xlu0 %1980, %v1084_v39   ;;  %1896 = vmatprep.subr.mxu1 %v2046_v6 }
 0x38b   : > { %1932 = vmatpush3.msra.mxu0 %v1501_v30  ;;  %1897 = vmatpush3.msra.mxu1 %v1208_v41 }
 0x38c   : > { %1933 = vmatprep.subr.mxu0 %v2046_v6  ;;  %1898 = vmatprep.subr.mxu1 %v2046_v6 }
 0x38d   : > { %1934 = vmatpush3.msra.mxu0 %v1500_v42  ;;  %1899 = vmatpush3.msra.mxu1 %v1207_v43 }
 0x38e   : > { %1115 = vperm.xlu0 %1980, %v1085_v20   ;;  %1935 = vmatprep.subr.mxu0 %v2046_v6 }
 0x38f   : > { %1900 = vmatprep.subr.mxu1 %v2046_v6  ;;  %1936 = vmatpush3.msra.mxu0 %v1499_v44 }
 0x390   : > { %1901 = vmatpush3.msra.mxu1 %v1206_v45  ;;  %1937 = vmatprep.subr.mxu0 %v2046_v6 }
 0x391   : > { %1902 = vmatprep.subr.mxu1 %v2046_v6  ;;  %1938 = vmatpush3.msra.mxu0 %v1498_v46 }
 0x392   : > { %1120 = vperm.xlu0 %1980, %v1086_v49   ;;  %1903 = vmatpush3.msra.mxu1 %v1205_v48 }
 0x393   : > { %1939 = vmatprep.subr.mxu0 %v2046_v6  ;;  %1907 = vmatprep.subr.mxu1 %v2046_v6 }
 0x394   : > { %1940 = vmatpush3.msra.mxu0 %v1497_v52 }
 0x396   : > { %1125 = vperm.xlu0 %1980, %v1087_v50  }
 0x39a   : > { %1130 = vperm.xlu0 %1980, %v1088_v51  }
 0x39e   : > { %1135 = vperm.xlu0 %1980, %v1089_v56  }
 0x3fd   : > { %v1101_v54 = vpop.permute.xlu0 %1100 }
 0x3fe   : > { %v1138_v62 = vmul.f32 %v1101_v54, %v1090_v58 }
 0x400   : > { %v1147_v7 = vsel %vm1146_vm12, %v1138_v62, 0.0 }
 0x401   : > { %v1106_v57 = vpop.permute.xlu0 %1105  ;;  %v1148_v17 = vrot.slane %v1147_v7, 4 }
 0x402   : > { %v1139_v60 = vmul.f32 %v1106_v57, %v1091_v55 }
 0x403   : > { %v1149_v34 = vadd.f32 %v1148_v17, %v1147_v7 }
 0x404   : > { %v1154_v2 = vsel %vm1146_vm12, %v1139_v60, 0.0 }
 0x405   : > { %v1111_v61 = vpop.permute.xlu0 %1110  ;;  %v1155_v11 = vrot.slane %v1154_v2, 4  ;;  %v1150_v49 = vrot.slane %v1149_v34, 2 }
 0x406   : > { %v1140_v0 = vmul.f32 %v1111_v61, %v1092_v59 }
 0x407   : > { %v1156_v31 = vadd.f32 %v1155_v11, %v1154_v2  ;;  %v1151_v8 = vadd.f32 %v1150_v49, %v1149_v34  ;;  %v1203_v34 = vld [vmem:[%s2612_s8] sm:$0xff] }
 0x408   : > { %v1161_v4 = vsel %vm1146_vm12, %v1140_v0, 0.0 }
 0x409   : > { %v1116_v5 = vpop.permute.xlu0 %1115  ;;  %v1162_v14 = vrot.slane %v1161_v4, 4  ;;  %v1157_v38 = vrot.slane %v1156_v31, 2  ;;  %v1152_v53 = vrot.slane %v1151_v8, 1 }
 0x40a   : > { %v1141_v9 = vmul.f32 %v1116_v5, %v1093_v1 }
 0x40b   : > { %v1163_v13 = vadd.f32 %v1162_v14, %v1161_v4  ;;  %v1158_v56 = vadd.f32 %v1157_v38, %v1156_v31  ;;  %v1153_v1 = vadd.f32 %v1152_v53, %v1151_v8 }
 0x40c   : > { %v1168_v16 = vsel %vm1146_vm12, %v1141_v9, 0.0 }
 0x40d   : > { %v1169_v21 = vrot.slane %v1168_v16, 4  ;;  %v1121_v22 = vpop.permute.xlu0 %1120  ;;  %v1164_v20 = vrot.slane %v1163_v13, 2  ;;  %v1159_v44 = vrot.slane %v1158_v56, 1 }
 0x40e   : > { %v1142_v24 = vmul.f32 %v1121_v22, %v1094_v12 }
 0x40f   : > { %v1170_v35 = vadd.f32 %v1169_v21, %v1168_v16  ;;  %v1165_v15 = vadd.f32 %v1164_v20, %v1163_v13  ;;  %v1160_v59 = vadd.f32 %v1159_v44, %v1158_v56  ;;  %v1204_v13 = vld [vmem:[%s2612_s8 + $0x8] sm:$0xff] }
 0x410   : > { %v1175_v33 = vsel %vm1146_vm12, %v1142_v24, 0.0  ;;  %v1494_v44 = vld [vmem:[%s2617_s13 + $0x8] sm:$0xff] }
 0x411   : > { %v1176_v36 = vrot.slane %v1175_v33, 4  ;;  %v1126_v37 = vpop.permute.xlu0 %1125  ;;  %v1171_v19 = vrot.slane %v1170_v35, 2  ;;  %v1166_v48 = vrot.slane %v1165_v15, 1  ;;  %v1221_v9 = vsel %vm881_vm4, %v1160_v59, %v1153_v1  ;;  %v1651_v59 = vld [vmem:[%s2619_s15 + $0x8] sm:$0xff] }
 0x412   : > { %v1143_v25 = vmul.f32 %v1126_v37, %v1095_v32  ;;  %v1384_v37 = vld [vmem:[%s2615_s11 + $0x8] sm:$0xff] }
 0x413   : > { %v1177_v39 = vadd.f32 %v1176_v36, %v1175_v33  ;;  %v1172_v28 = vadd.f32 %v1171_v19, %v1170_v35  ;;  %v1167_v0 = vadd.f32 %v1166_v48, %v1165_v15  ;;  %v1386_v35 = vld [vmem:[%s2615_s11 + $0x18] sm:$0xff]  ;;  %v1385_v36 = vld [vmem:[%s2615_s11 + $0x10] sm:$0xff]  ;;  %v2021_v48 = vld [vmem:[#allocation2] sm:$0xff] }
 0x414   : > { %v1182_v18 = vsel %vm1146_vm12, %v1143_v25, 0.0  ;;  %v1383_v25 = vld [vmem:[%s2615_s11] sm:$0xff] }
 0x415   : > { %v1183_v50 = vrot.slane %v1182_v18, 4  ;;  %v1131_v23 = vpop.permute.xlu0 %1130  ;;  %v1178_v51 = vrot.slane %v1177_v39, 2  ;;  %v1173_v54 = vrot.slane %v1172_v28, 1  ;;  %v1222_v14 = vsel %vm883_vm5, %v1167_v0, %v1221_v9 }
 0x416   : > { %v1144_v26 = vmul.f32 %v1131_v23, %v1096_v40 }
 0x417   : > { %v1184_v63 = vadd.f32 %v1183_v50, %v1182_v18  ;;  %v1179_v42 = vadd.f32 %v1178_v51, %v1177_v39  ;;  %v1174_v2 = vadd.f32 %v1173_v54, %v1172_v28  ;;  %v1776_v50 = vld [vmem:[%s2616_s12] ss:$0 sm:$0xff] }
 0x418   : > { %v1189_v3 = vsel %vm1146_vm12, %v1144_v26, 0.0  ;;  %v1775_v26 = vld [vmem:[%s2627_s10] ss:$0 sm:$0xff] }
 0x419   : > { %v1185_v29 = vrot.slane %v1184_v63, 2  ;;  %v1190_v30 = vrot.slane %v1189_v3, 4  ;;  %v1136_v41 = vpop.permute.xlu0 %1135  ;;  %v1180_v58 = vrot.slane %v1179_v42, 1  ;;  %v1223_v17 = vsel %vm885_vm6, %v1174_v2, %v1222_v14 }
 0x41a   : > { %v1145_v43 = vmul.f32 %v1136_v41, %v1097_v27 }
 0x41b   : > { %v1186_v45 = vadd.f32 %v1185_v29, %v1184_v63  ;;  %v1191_v46 = vadd.f32 %v1190_v30, %v1189_v3  ;;  %v1181_v7 = vadd.f32 %v1180_v58, %v1179_v42  ;;  %v1496_v42 = vld [vmem:[%s2617_s13 + $0x18] sm:$0xff] }
 0x41c   : > { %v1196_v52 = vsel %vm1146_vm12, %v1145_v43, 0.0  ;;  %v1495_v43 = vld [vmem:[%s2617_s13 + $0x10] sm:$0xff] }
 0x41d   : > { %v1192_v55 = vrot.slane %v1191_v46, 2  ;;  %v1197_v57 = vrot.slane %v1196_v52, 4  ;;  %v1187_v60 = vrot.slane %v1186_v45, 1  ;;  %v1224_v22 = vsel %vm887_vm7, %v1181_v7, %v1223_v17 }
 0x41f   : > { %v1193_v61 = vadd.f32 %v1192_v55, %v1191_v46  ;;  %v1198_v62 = vadd.f32 %v1197_v57, %v1196_v52  ;;  %v1188_v11 = vadd.f32 %v1187_v60, %v1186_v45  ;;  %v1493_v46 = vld [vmem:[%s2617_s13] sm:$0xff] }
 0x421   : > { %v1194_v4 = vrot.slane %v1193_v61, 1  ;;  %v1199_v5 = vrot.slane %v1198_v62, 2  ;;  %v1225_v31 = vsel %vm889_vm8, %v1188_v11, %v1224_v22 }
 0x423   : > { %v1200_v12 = vadd.f32 %v1199_v5, %v1198_v62  ;;  %v1195_v16 = vadd.f32 %v1194_v4, %v1193_v61  ;;  %v1650_v61 = vld [vmem:[%s2619_s15] sm:$0xff] }
 0x424   : > { %v1782_v4 = vld [vmem:[%s2620_s16] ss:$0 sm:$0xff] }
 0x425   : > { %v1201_v21 = vrot.slane %v1200_v12, 1  ;;  %v1226_v32 = vsel %vm891_vm9, %v1195_v16, %v1225_v31 }
 0x427   : > { %v1202_v24 = vadd.f32 %v1201_v21, %v1200_v12 }
 0x429   : > { %v1227_v33 = vsel %vm893_vm10, %v1202_v24, %v1226_v32 }
 0x42a   : > { %1905 = vmatmul.mubr.msk.f32.vlgmr.msra.gmra.mxu1 %vm1228_vm13, %v1227_v33  ;;  %1942 = vmatmul.mubr.msk.f32.vlgmr.msra.gmra.mxu0 %vm1228_vm13, %v1227_v33 }
 0x42b   : > { %1908 = vmatpush3.msra.mxu1 %v1204_v13  ;;  %1911 = vmatprep.mubr.msk.f32.mxu1 %vm2047_vm1, %v2046_v6 }
 0x42c   : > { %1909 = vmatprep.subr.mxu1 %v2046_v6 }
 0x42d   : > { %1910 = vmatpush3.msra.mxu1 %v1203_v34 }
 0x42e   : > { %1914 = vmatprep.subr.mxu1 %v2046_v6  ;;  %1912 = vmatmul.mubr.msk.f32.vlgmr.msra.gmra.mxu1 %vm1301_vm14, %v2468_v47 }
 0x42f   : > { %1915 = vmatpush3.msra.mxu1 %v1386_v35  ;;  %1922 = vmatprep.mubr.msk.f32.mxu1 %vm2047_vm1, %v2046_v6 }
 0x430   : > { %1916 = vmatprep.subr.mxu1 %v2046_v6 }
 0x431   : > { %1917 = vmatpush3.msra.mxu1 %v1385_v36 }
 0x432   : > { %1918 = vmatprep.subr.mxu1 %v2046_v6 }
 0x433   : > { %1919 = vmatpush3.msra.mxu1 %v1384_v37 }
 0x434   : > { %1920 = vmatprep.subr.mxu1 %v2046_v6 }
 0x435   : > { %1921 = vmatpush3.msra.mxu1 %v1383_v25 }
 0x436   : > { %1923 = vmatmul.mubr.msk.f32.vlgmr.msra.gmra.mxu1 %vm611_vm2, %v2180_v10  ;;  %1944 = vmatprep.subr.mxu1 %v2046_v6 }
 0x437   : > { %1952 = vmatprep.mubr.msk.f32.mxu1 %vm2047_vm1, %v2046_v6  ;;  %1945 = vmatpush3.msra.mxu1 %v1496_v42 }
 0x438   : > { %1946 = vmatprep.subr.mxu1 %v2046_v6 }
 0x439   : > { %1947 = vmatpush3.msra.mxu1 %v1495_v43 }
 0x43a   : > { %1948 = vmatprep.subr.mxu1 %v2046_v6 }
 0x43b   : > { %1949 = vmatpush3.msra.mxu1 %v1494_v44 }
 0x43c   : > { %1950 = vmatprep.subr.mxu1 %v2046_v6 }
 0x43d   : > { %1951 = vmatpush3.msra.mxu1 %v1493_v46 }
 0x43e   : > { %1955 = vmatprep.subr.mxu1 %v2046_v6 }
 0x4ea   : > { %v1297_v38 = vpop.f32.mrf.mxu1  ;;  %v2554_v39 = vpop.f32.mrf.mxu0 }
 0x4ec   : > { %v1906_v40 = vpop.f32.mrf.mxu1  ;;  %v1943_v20 = vpop.f32.mrf.mxu0 }
 0x4ee   : > { %v1371_v18 = vpop.f32.mrf.mxu1 }
 0x4ef   : > { %v1372_v49 = vadd.f32 %v1371_v18, %v1297_v38 }
 0x4f0   : > { %v1913_v19 = vpop.f32.mrf.mxu1 }
 0x4f1   : > { %v1382_v56 = vadd.f32 %v1775_v26, %v1372_v49 }
 0x4f6   : > { %v1460_v23 = vpop.f32.mrf.mxu1 }
 0x4f7   : > { %v1461_v51 = vadd.f32 %v1776_v50, %v1460_v23 }
 0x4f8   : > { %v1924_v10 = vpop.f32.mrf.mxu1 }
 0x4f9   : > { %1472 = vrot.lane.b32.xlu1 %v1461_v51, %s2050_s25  ;;  %v1464_v63 = vadd.f32 %v1461_v51, %v1382_v56 }
 0x4fb   : > { %v1778_v27 = vmul.f32 -1.442695, %v1464_v63 }
 0x4fd   : > { %2015 = vpow2.f32 %v1778_v27 }
 0x50a   : > { %v2016_v15 = vpop.eup %2015 }
 0x50b   : > { %v1468_v3 = vadd.f32 1.0, %v2016_v15 }
 0x50d   : > { %2017 = vrcp.f32 %v1468_v3 }
 0x51a   : > { %v2018_v8 = vpop.eup %2017 }
 0x51b   : > { %v1482_v53 = vsub.f32 1.0, %v2018_v8 }
 0x56b   : > { %v1473_v28 = vpop.permute.xlu1 %1472 }
 0x56c   : > { %v1475_v29 = vmul.f32 %v2018_v8, %v1473_v28 }
 0x56e   : > { %1477 = vrot.lane.b32.xlu0 %v1475_v29, %s2050_s25  ;;  %s2052_s25 = smov 32  }
 0x5e0   : > { %v1478_v30 = vpop.permute.xlu0 %1477 }
 0x5e1   : > { %v1480_v41 = vadd.f32 %v1478_v30, %v1382_v56 }
 0x5e3   : > { %2019 = vtanh.f32 %v1480_v41 }
 0x5f0   : > { %v2020_v45 = vpop.eup %2019 }
 0x5f1   : > { %1484 = vrot.lane.b32.xlu0 %v2020_v45, %s2051_s1 }
 0x5f5   : > { %1488 = vrot.lane.b32.xlu0 %v2021_v48, %s2052_s25 }
 0x663   : > { %v1485_v52 = vpop.permute.xlu0 %1484 }
 0x664   : > { %v1487_v55 = vmul.f32 %v1485_v52, %v1482_v53 }
 0x667   : > { %v1489_v54 = vpop.permute.xlu0 %1488 }
 0x668   : > { %v1491_v57 = vmul.f32 %v2018_v8, %v1489_v54 }
 0x66a   : > { %v1492_v58 = vadd.f32 %v1491_v57, %v1487_v55 }
 0x66c   : > { %1576 = vrot.lane.b32.xlu0 %v1492_v58, %s2051_s1 }
 0x6de   : > { %v1577_v60 = vpop.permute.xlu0 %1576 }
 0x6df   : > { %1745 = vst.msk [vmem:[#allocation2] sm:$0xff] %vm611_vm2, %v1577_v60  ;;  %1953 = vmatmul.mubr.msk.f32.vlgmr.msra.gmra.mxu1 %vm611_vm2, %v1577_v60 }
 0x6e0   : > { %1956 = vmatpush3.msra.mxu1 %v1651_v59  ;;  %1959 = vmatprep.mubr.msk.f32.mxu1 %vm2047_vm1, %v2046_v6 }
 0x6e1   : > { %1957 = vmatprep.subr.mxu1 %v2046_v6 }
 0x6e2   : > { %1958 = vmatpush3.msra.mxu1 %v1650_v61 }
 0x6e3   : > { %1960 = vmatmul.mubr.msk.f32.vlgmr.msra.gmra.mxu1 %vm1301_vm14, %v2468_v47  ;;  %v1733_v47 = vld [vmem:[#allocation4] sm:$0xff] }
 0x79f   : > { %v1646_v62 = vpop.f32.mrf.mxu1 }
 0x7a0   : > { %v1647_v1 = vadd.f32 %v1646_v62, %v2554_v39 }
 0x7a1   : > { %v1954_v0 = vpop.f32.mrf.mxu1 }
 0x7a3   : > { %v1718_v2 = vpop.f32.mrf.mxu1 }
 0x7a4   : > { %v1722_v5 = vadd.f32 %v1718_v2, %v1647_v1 }
 0x7a5   : > { %v1961_v7 = vpop.f32.mrf.mxu1 }
 0x7a6   : > { %v1730_v9 = vadd.f32 %v1782_v4, %v1722_v5 }
 0x7a8   : > { %1732 = vst [vmem:[%s1731_s23] sm:$0xff] %v1730_v9  ;;  %1734 = vmax.xlane.f32.xlu1 %v1730_v9 }
 0x831   : > { %v1735_v11 = vpop.xlane.xlu1 %1734 }
 0x832   : > { %vm1736_vm15 = vcmp.eq.f32.partialorder %v1730_v9, %v1735_v11 }
 0x833   : > { %v1737_v12 = vsel %vm1736_vm15, %v1733_v47, 128.0 }
 0x834   : > { %1738 = vmin.xlane.f32.xlu0 %v1737_v12 }
 0x8bd   : > { %v1739_v14 = vpop.xlane.xlu0 %1738 }
 0x8be   : > { %vm1740_vm0 = vcmp.eq.f32.partialorder %v1733_v47, %v1739_v14 }
 0x8bf   : > { %v1783_v16 = vsel %vm1740_vm0, 1.0, %v2046_v6 }
 0x8c0   : > { %1743 = vst [vmem:[#allocation3] sm:$0xff] %v1783_v16 }
 0x8c1 PF: > { %s33_s29 = sadd.s32 1, %s2042_s29  }
 0x8c2   : > { %p30_p10 = scmp.ge.s32.totalorder %s33_s29, 9  }
 0x8c4   :  { %32 = sbr.rel (!%p30_p10) target bundleno = 25 (0x19), region = 113 }

</bundles_post_ra>
